<compile_context>
chip_gen: v6e
topology: v6e:2x2x1
jax: 0.10.0
libtpu: 0.0.40
codegen_flags: <defaults>
</compile_context>

<pallas_src>
import math

import jax
import jax.numpy as jnp
from jax.experimental import pallas as pl
from jax.experimental.pallas import tpu as pltpu


def _round_up(x, m):
    return (x + m - 1) // m * m


# ---------------------------------------------------------------------------
# Flat "halo" layout
# ---------------------------------------------------------------------------
# Per image the (C, H, W) tensor is stored as (C, Lp): the zero-padded image
# (H+2, Wp) (halo of 1; width rounded up to a power of two so in-kernel masks
# need only bit-ops, never vector integer division) is flattened and placed at
# lane offset OFF; all other lanes are zero.  OFF is chosen so the conv-output
# store starts at the 128-aligned lane offset STORE_OFF = OFF + Wp + 1
# (output pixel (h, w) lands at padded cell (h+1, w+1)).

def _layout(H, W):
    Wp = max(8, pl.next_power_of_2(W + 2))
    store_off = _round_up(Wp + 1, 128)
    off = store_off - (Wp + 1)
    Lp = _round_up(off + (H + 2) * Wp + 2, 128)   # +2: over-read slack, last tap
    return Wp, off, store_off, Lp


def _pack_nchw(x_nchw, cin_pad, Wp, off, Lp):
    """(N, C, H, W) f32 -> (N, cin_pad, Lp) bf16 flat-halo layout (zero halo)."""
    n, c, h, w = x_nchw.shape
    xp = jnp.pad(x_nchw, ((0, 0), (0, cin_pad - c), (1, 1), (1, Wp - w - 1)))
    xf = xp.reshape(n, cin_pad, (h + 2) * Wp)
    xf = jnp.pad(xf, ((0, 0), (0, 0), (off, Lp - off - (h + 2) * Wp)))
    return xf.astype(jnp.bfloat16)


def _stack_weights(w_hwio, cin_pad):
    """(3,3,ci,co) HWIO -> (co, 9*cin_pad) bf16 K-dense tap-major stack."""
    kh, kw, ci, co = w_hwio.shape
    wt = jnp.transpose(w_hwio, (3, 0, 1, 2))                       # (co,3,3,ci)
    wt = jnp.pad(wt, ((0, 0), (0, 0), (0, 0), (0, cin_pad - ci)))
    return wt.reshape(co, kh * kw * cin_pad).astype(jnp.bfloat16)


def _vmem_limit(block_bytes):
    # v5e/v6e have 128 MiB physical VMEM (could go toward ~100 MiB for large
    # shapes); v7x only has 64 MiB, so cap there.
    # TODO(synk): for realistic C/H/W on v7x, switch to halo'd row tiling
    # (grid over H) and/or >=2 parallel grid steps per call so both TCs work.
    return int(min(64 << 20, max(32 << 20, 6 * block_bytes)))


# ---------------------------------------------------------------------------
# Fused conv3x3 (+ optional BN+ReLU input prologue) + BN-stat epilogue kernel
# ---------------------------------------------------------------------------

def _make_conv_kernel(Bt, cin_x, cin_pad, cout, H, W, Wp, Lp, off, store_off,
                      fused_prologue):
    lout = H * Wp                      # flattened output lanes per image
    ltot = Bt * lout
    suffix = Lp - store_off - lout
    offs = [off + dh * Wp + dw for dh in range(3) for dw in range(3)]

    def kernel(*refs):
        if fused_prologue:
            x_ref, w_ref, s_ref, t_ref, y_ref, st_ref, patch_ref = refs
        else:
            x_ref, w_ref, y_ref, st_ref, patch_ref = refs

        if fused_prologue:
            # Interior-lane mask generated in-kernel (iota + bit ops, no DMA):
            # re-zeroes the halo/junk lanes the fused BN shift would fill.
            lane = jax.lax.broadcasted_iota(jnp.int32, (1, Lp), 1)
            rel = lane - off
            col = rel & (Wp - 1)
            interior = ((rel >= Wp) & (rel < (H + 1) * Wp)
                        & (col >= 1) & (col <= W))

        # Build the (9*cin_pad, Bt*lout) implicit-im2col patch in VMEM with
        # 8-aligned, lane-dense stores; every row/lane is rewritten each step.
        for b in range(Bt):
            if fused_prologue:
                ab = x_ref[b] * s_ref[...] + t_ref[...]        # bf16 BN1 apply
                ab = jnp.maximum(ab, 0.0)                      # ReLU
                ab = jnp.where(interior, ab, jnp.zeros_like(ab))
            else:
                ab = x_ref[b]                                  # zero-padded bf16
            if cin_pad != cin_x:                               # generic fallback
                ab = jnp.pad(ab, ((0, cin_pad - cin_x), (0, 0)))
            for t in range(9):
                patch_ref[t * cin_pad:(t + 1) * cin_pad,
                          b * lout:(b + 1) * lout] = ab[:, offs[t]:offs[t] + lout]

        # One K-dense MXU matmul (K = 9*cin_pad) replaces 9 K=cin matmuls.
        acc = jnp.dot(w_ref[...], patch_ref[...],
                      preferred_element_type=jnp.float32)      # (cout, Bt*lout)

        # Zero junk columns (w >= W) so they poison neither stats nor halos.
        jlane = jax.lax.broadcasted_iota(jnp.int32, (1, ltot), 1)
        acc = jnp.where((jlane & (Wp - 1)) < W, acc, jnp.zeros_like(acc))

        # Fused per-channel BatchNorm batch-stat partials (single store).
        # NOTE: E[x^2]-E[x]^2 in f32 is fine for these activation ranges;
        # switch to a shifted/Welford accumulation for large-mean activations.
        st_ref[0] = jnp.concatenate(
            [jnp.sum(acc, axis=1, keepdims=True),
             jnp.sum(acc * acc, axis=1, keepdims=True)], axis=1)

        # Store in the padded flat layout so the next conv consumes it directly.
        # Prefix / interior / suffix stores together cover every output lane
        # exactly once (no zero-then-overwrite, no stale VMEM writeback).
        zpre = jnp.zeros((cout, store_off), jnp.bfloat16)
        zsuf = jnp.zeros((cout, suffix), jnp.bfloat16)
        for b in range(Bt):
            y_ref[b, :, 0:store_off] = zpre
            y_ref[b, :, store_off:store_off + lout] = (
                acc[:, b * lout:(b + 1) * lout].astype(jnp.bfloat16))
            y_ref[b, :, store_off + lout:Lp] = zsuf

    return kernel


def _conv3x3_bn_stats(x_flat, w_stack, *, Bt, cout, H, W, Wp, Lp, off,
                      store_off, prologue=None):
    """x_flat: (N, cin_x, Lp) bf16; w_stack: (cout, 9*cin_pad) bf16.
    Returns (y (N, cout, Lp) bf16 flat-halo, stats (steps, cout, 2) f32)."""
    n, cin_x, _ = x_flat.shape
    cin_pad = w_stack.shape[1] // 9
    steps = n // Bt
    lout = H * Wp

    kern = _make_conv_kernel(Bt, cin_x, cin_pad, cout, H, W, Wp, Lp, off,
                             store_off, prologue is not None)

    in_specs = [pl.BlockSpec((Bt, cin_x, Lp), lambda i: (i, 0, 0)),
                pl.BlockSpec((cout, 9 * cin_pad), lambda i: (0, 0))]
    args = [x_flat, w_stack]
    if prologue is not None:
        s, t = prologue
        in_specs += [pl.BlockSpec((cin_x, 1), lambda i: (0, 0)),
                     pl.BlockSpec((cin_x, 1), lambda i: (0, 0))]
        args += [s, t]

    block_bytes = (2 * Bt * (cin_x + cout) * Lp          # bf16 in/out blocks
                   + 2 * 9 * cin_pad * Bt * lout         # bf16 patch scratch
                   + 4 * cout * Bt * lout)               # f32 accumulator

    return pl.pallas_call(
        kern,
        out_shape=(jax.ShapeDtypeStruct((n, cout, Lp), jnp.bfloat16),
                   jax.ShapeDtypeStruct((steps, cout, 2), jnp.float32)),
        grid=(steps,),
        in_specs=in_specs,
        out_specs=(pl.BlockSpec((Bt, cout, Lp), lambda i: (i, 0, 0)),
                   pl.BlockSpec((1, cout, 2), lambda i: (i, 0, 0))),
        scratch_shapes=[pltpu.VMEM((9 * cin_pad, Bt * lout), jnp.bfloat16)],
        compiler_params=pltpu.CompilerParams(
            dimension_semantics=("parallel",),
            vmem_limit_bytes=_vmem_limit(block_bytes)),
    )(*args)


# ---------------------------------------------------------------------------
# Final BN + ReLU with the un-halo unpack fused in (lane-dense output).
# ---------------------------------------------------------------------------

def _bn_relu_unpack(y_flat, scale, shift, *, Bt, store_off, lout):
    n, c, lp = y_flat.shape
    steps = n // Bt

    def kernel(y_ref, s_ref, t_ref, o_ref):
        for b in range(Bt):
            yb = y_ref[b, :, store_off:store_off + lout].astype(jnp.float32)
            o_ref[b] = jnp.maximum(yb * s_ref[...] + t_ref[...], 0.0)

    block_bytes = Bt * c * (2 * lp + 4 * lout)
    return pl.pallas_call(
        kernel,
        out_shape=jax.ShapeDtypeStruct((n, c, lout), jnp.float32),
        grid=(steps,),
        in_specs=[pl.BlockSpec((Bt, c, lp), lambda i: (i, 0, 0)),
                  pl.BlockSpec((c, 1), lambda i: (0, 0)),
                  pl.BlockSpec((c, 1), lambda i: (0, 0))],
        out_specs=pl.BlockSpec((Bt, c, lout), lambda i: (i, 0, 0)),
        compiler_params=pltpu.CompilerParams(
            dimension_semantics=("parallel",),
            vmem_limit_bytes=_vmem_limit(block_bytes)),
    )(y_flat, scale, shift)


def _bn_affine(stats, count, gamma, beta, eps=1e-5):
    """Per-channel (scale, shift) from accumulated (sum, sumsq) partials."""
    s = jnp.sum(stats, axis=0)                               # (C, 2)
    mean = s[:, 0] / count
    var = jnp.maximum(s[:, 1] / count - mean * mean, 0.0)    # biased variance
    scale = gamma / jnp.sqrt(var + eps)
    shift = beta - mean * scale
    return (scale.reshape(-1, 1).astype(jnp.float32),
            shift.reshape(-1, 1).astype(jnp.float32))


def _pick_bt(n, cin_pad, cout, Lp, lout, budget=4 << 20):
    """Largest divisor of n whose per-step block footprint fits the budget."""
    per_img = 2 * (cin_pad + cout) * Lp + 2 * 9 * cin_pad * lout + 4 * cout * lout
    bt = max(1, min(n, budget // max(per_img, 1)))
    while n % bt:
        bt -= 1
    return bt


# ---------------------------------------------------------------------------
# conv_block_3 forward
# ---------------------------------------------------------------------------

def conv_block_3_forward(params, x_nchw):
    n, cin, H, W = x_nchw.shape
    cout = params["w1"].shape[3]
    Wp, off, store_off, Lp = _layout(H, W)
    lout = H * Wp
    cin_pad = _round_up(cin, 8)
    cmid_pad = _round_up(cout, 8)
    count = float(n * H * W)
    Bt = _pick_bt(n, max(cin_pad, cmid_pad), cout, Lp, lout)

    x_flat = _pack_nchw(x_nchw.astype(jnp.float32), cin_pad, Wp, off, Lp)
    w1 = _stack_weights(params["w1"], cin_pad)     # (cout, 9*cin_pad)  bf16
    w2 = _stack_weights(params["w2"], cmid_pad)    # (cout, 9*cmid_pad) bf16

    # conv1 (+ fused BN1 batch-stat partials).  Conv biases elided (no-op
    # before a training-mode BatchNorm: the batch mean absorbs them exactly).
    y1, st1 = _conv3x3_bn_stats(x_flat, w1, Bt=Bt, cout=cout, H=H, W=W, Wp=Wp,
                                Lp=Lp, off=off, store_off=store_off)
    s1, t1 = _bn_affine(st1, count, params["g1"], params["b1"])

    # conv2 with BN1-apply + ReLU fused into its input prologue (+ BN2 stats).
    y2, st2 = _conv3x3_bn_stats(
        y1, w2, Bt=Bt, cout=cout, H=H, W=W, Wp=Wp, Lp=Lp, off=off,
        store_off=store_off,
        prologue=(s1.astype(jnp.bfloat16), t1.astype(jnp.bfloat16)))
    s2, t2 = _bn_affine(st2, count, params["g2"], params["b2"])

    # Final BN2 + ReLU, halo stripped in-kernel; only the Wp->W drop stays out.
    o = _bn_relu_unpack(y2, s2, t2, Bt=Bt, store_off=store_off, lout=lout)
    return o.reshape(n, cout, H, Wp)[:, :, :, :W]


# ---------------------------------------------------------------------------
# Parameters (PyTorch-like init) and a plain-JAX reference
# ---------------------------------------------------------------------------

def init_params(key, cin, cout):
    def conv_init(k, ci, co):
        bound = 1.0 / math.sqrt(ci * 9)
        kw_, kb_ = jax.random.split(k)
        w = jax.random.uniform(kw_, (3, 3, ci, co), jnp.float32, -bound, bound)
        b = jax.random.uniform(kb_, (co,), jnp.float32, -bound, bound)
        return w, b

    k1, k2 = jax.random.split(key)
    w1, b1c = conv_init(k1, cin, cout)
    w2, b2c = conv_init(k2, cout, cout)
    return {
        "w1": w1, "conv1_bias": b1c,   # biases kept for parity; cancelled by train-mode BN
        "w2": w2, "conv2_bias": b2c,
        "g1": jnp.ones((cout,), jnp.float32), "b1": jnp.zeros((cout,), jnp.float32),
        "g2": jnp.ones((cout,), jnp.float32), "b2": jnp.zeros((cout,), jnp.float32),
    }


def reference_forward(params, x):
    def conv(x, w):
        return jax.lax.conv_general_dilated(
            x, w, window_strides=(1, 1), padding=((1, 1), (1, 1)),
            dimension_numbers=("NCHW", "HWIO", "NCHW"))

    def bn_relu(y, gamma, beta, eps=1e-5):
        mean = jnp.mean(y, axis=(0, 2, 3), keepdims=True)
        var = jnp.mean((y - mean) ** 2, axis=(0, 2, 3), keepdims=True)
        yn = (y - mean) / jnp.sqrt(var + eps)
        return jnp.maximum(yn * gamma.reshape(1, -1, 1, 1) + beta.reshape(1, -1, 1, 1), 0.0)

    # Conv biases omitted: exactly cancelled by train-mode BN's mean subtraction.
    y = bn_relu(conv(x, params["w1"]), params["g1"], params["b1"])
    return bn_relu(conv(y, params["w2"]), params["g2"], params["b2"])


# ---------------------------------------------------------------------------

if __name__ == "__main__":
    N, CIN, COUT, H, W = 2, 4, 8, 16, 16

    key = jax.random.PRNGKey(0)
    kx, kp = jax.random.split(key)
    x = jax.random.normal(kx, (N, CIN, H, W), jnp.float32)
    params = init_params(kp, CIN, COUT)

    fwd = jax.jit(conv_block_3_forward)
    out = jax.block_until_ready(fwd(params, x))

    assert out.shape == (N, COUT, H, W), out.shape
    assert bool(jnp.all(jnp.isfinite(out)))

    ref = reference_forward(params, x)
    err = float(jnp.max(jnp.abs(out - ref)))
    assert err < 0.1, f"max|out - ref| = {err}"   # bf16 MXU operands / intermediates

    print("KERNEL_OK")
</pallas_src>

<mosaic_0001>
module attributes {stable_mosaic.version = 11 : i64} {
  func.func @kernel(%arg0: i32, %arg1: memref<2x8x768xbf16, #tpu.memory_space<vmem>>, %arg2: memref<8x1xf32, #tpu.memory_space<vmem>>, %arg3: memref<8x1xf32, #tpu.memory_space<vmem>>, %arg4: memref<2x8x512xf32, #tpu.memory_space<vmem>>) attributes {dimension_semantics = [#tpu.dimension_semantics<parallel>], iteration_bounds = array<i64: 1>, scalar_prefetch = 0 : i64, scratch_operands = 0 : i64, tpu.core_type = #tpu.core_type<tc>, window_params = [{transform_indices = @transform_0, window_bounds = array<i64: 2, 8, 768>}, {pipeline_mode = #tpu.pipeline_mode<synchronous>, transform_indices = @transform_1, window_bounds = array<i64: 8, 1>}, {pipeline_mode = #tpu.pipeline_mode<synchronous>, transform_indices = @transform_2, window_bounds = array<i64: 8, 1>}, {transform_indices = @transform_3, window_bounds = array<i64: 2, 8, 512>}]} {
    %c0 = arith.constant 0 : index
    %c0_0 = arith.constant 0 : index
    %c128 = arith.constant 128 : index
    %0 = vector.load %arg1[%c0, %c0_0, %c128] : memref<2x8x768xbf16, #tpu.memory_space<vmem>>, vector<1x8x512xbf16>
    %1 = vector.shape_cast %0 : vector<1x8x512xbf16> to vector<8x512xbf16>
    %2 = arith.extf %1 : vector<8x512xbf16> to vector<8x512xf32>
    %c0_1 = arith.constant 0 : index
    %c0_2 = arith.constant 0 : index
    %3 = vector.load %arg2[%c0_1, %c0_2] : memref<8x1xf32, #tpu.memory_space<vmem>>, vector<8x1xf32>
    %4 = vector.broadcast %3 : vector<8x1xf32> to vector<8x512xf32>
    %5 = arith.mulf %2, %4 : vector<8x512xf32>
    %c0_3 = arith.constant 0 : index
    %c0_4 = arith.constant 0 : index
    %6 = vector.load %arg3[%c0_3, %c0_4] : memref<8x1xf32, #tpu.memory_space<vmem>>, vector<8x1xf32>
    %7 = vector.broadcast %6 : vector<8x1xf32> to vector<8x512xf32>
    %8 = arith.addf %5, %7 : vector<8x512xf32>
    %cst = arith.constant 0.000000e+00 : f32
    %9 = vector.broadcast %cst : f32 to vector<8x512xf32>
    %10 = arith.maximumf %8, %9 : vector<8x512xf32>
    %c0_5 = arith.constant 0 : index
    %c0_6 = arith.constant 0 : index
    %c0_7 = arith.constant 0 : index
    %11 = vector.load %arg4[%c0_5, %c0_6, %c0_7] : memref<2x8x512xf32, #tpu.memory_space<vmem>>, vector<1x8x512xf32>
    %12 = vector.shape_cast %11 : vector<1x8x512xf32> to vector<8x512xf32>
    %13 = vector.shape_cast %10 : vector<8x512xf32> to vector<1x8x512xf32>
    tpu.vector_store %arg4[%c0_5, %c0_6, %c0_7], %13 {strides = array<i32>} : memref<2x8x512xf32, #tpu.memory_space<vmem>>, vector<1x8x512xf32>,
    %c1 = arith.constant 1 : index
    %c0_8 = arith.constant 0 : index
    %c128_9 = arith.constant 128 : index
    %14 = vector.load %arg1[%c1, %c0_8, %c128_9] : memref<2x8x768xbf16, #tpu.memory_space<vmem>>, vector<1x8x512xbf16>
    %15 = vector.shape_cast %14 : vector<1x8x512xbf16> to vector<8x512xbf16>
    %16 = arith.extf %15 : vector<8x512xbf16> to vector<8x512xf32>
    %c0_10 = arith.constant 0 : index
    %c0_11 = arith.constant 0 : index
    %17 = vector.load %arg2[%c0_10, %c0_11] : memref<8x1xf32, #tpu.memory_space<vmem>>, vector<8x1xf32>
    %18 = vector.broadcast %17 : vector<8x1xf32> to vector<8x512xf32>
    %19 = arith.mulf %16, %18 : vector<8x512xf32>
    %c0_12 = arith.constant 0 : index
    %c0_13 = arith.constant 0 : index
    %20 = vector.load %arg3[%c0_12, %c0_13] : memref<8x1xf32, #tpu.memory_space<vmem>>, vector<8x1xf32>
    %21 = vector.broadcast %20 : vector<8x1xf32> to vector<8x512xf32>
    %22 = arith.addf %19, %21 : vector<8x512xf32>
    %cst_14 = arith.constant 0.000000e+00 : f32
    %23 = vector.broadcast %cst_14 : f32 to vector<8x512xf32>
    %24 = arith.maximumf %22, %23 : vector<8x512xf32>
    %c1_15 = arith.constant 1 : index
    %c0_16 = arith.constant 0 : index
    %c0_17 = arith.constant 0 : index
    %25 = vector.load %arg4[%c1_15, %c0_16, %c0_17] : memref<2x8x512xf32, #tpu.memory_space<vmem>>, vector<1x8x512xf32>
    %26 = vector.shape_cast %25 : vector<1x8x512xf32> to vector<8x512xf32>
    %27 = vector.shape_cast %24 : vector<8x512xf32> to vector<1x8x512xf32>
    tpu.vector_store %arg4[%c1_15, %c0_16, %c0_17], %27 {strides = array<i32>} : memref<2x8x512xf32, #tpu.memory_space<vmem>>, vector<1x8x512xf32>,
    return
  }
  func.func @transform_0(%arg0: i32) -> (i32, i32, i32) {
    %c0_i32 = arith.constant 0 : i32
    %c0_i32_0 = arith.constant 0 : i32
    %c0_i32_1 = arith.constant 0 : i32
    return %arg0, %c0_i32, %c0_i32_0 : i32, i32, i32
  }
  func.func @transform_1(%arg0: i32) -> (i32, i32) {
    %c0_i32 = arith.constant 0 : i32
    %c0_i32_0 = arith.constant 0 : i32
    %c0_i32_1 = arith.constant 0 : i32
    return %c0_i32, %c0_i32_0 : i32, i32
  }
  func.func @transform_2(%arg0: i32) -> (i32, i32) {
    %c0_i32 = arith.constant 0 : i32
    %c0_i32_0 = arith.constant 0 : i32
    %c0_i32_1 = arith.constant 0 : i32
    return %c0_i32, %c0_i32_0 : i32, i32
  }
  func.func @transform_3(%arg0: i32) -> (i32, i32, i32) {
    %c0_i32 = arith.constant 0 : i32
    %c0_i32_0 = arith.constant 0 : i32
    %c0_i32_1 = arith.constant 0 : i32
    return %arg0, %c0_i32, %c0_i32_0 : i32, i32, i32
  }
}

module attributes {stable_mosaic.version = 11 : i64} {
  func.func @kernel(%arg0: i32, %arg1: memref<2x8x768xbf16, #tpu.memory_space<vmem>>, %arg2: memref<8x72xbf16, #tpu.memory_space<vmem>>, %arg3: memref<8x1xbf16, #tpu.memory_space<vmem>>, %arg4: memref<8x1xbf16, #tpu.memory_space<vmem>>, %arg5: memref<2x8x768xbf16, #tpu.memory_space<vmem>>, %arg6: memref<1x8x2xf32, #tpu.memory_space<vmem>>, %arg7: memref<72x1024xbf16, #tpu.memory_space<vmem>>) attributes {dimension_semantics = [#tpu.dimension_semantics<parallel>], iteration_bounds = array<i64: 1>, scalar_prefetch = 0 : i64, scratch_operands = 1 : i64, tpu.core_type = #tpu.core_type<tc>, window_params = [{transform_indices = @transform_0, window_bounds = array<i64: 2, 8, 768>}, {pipeline_mode = #tpu.pipeline_mode<synchronous>, transform_indices = @transform_1, window_bounds = array<i64: 8, 72>}, {pipeline_mode = #tpu.pipeline_mode<synchronous>, transform_indices = @transform_2, window_bounds = array<i64: 8, 1>}, {pipeline_mode = #tpu.pipeline_mode<synchronous>, transform_indices = @transform_3, window_bounds = array<i64: 8, 1>}, {transform_indices = @transform_4, window_bounds = array<i64: 2, 8, 768>}, {transform_indices = @transform_5, window_bounds = array<i64: 1, 8, 2>}]} {
    %0 = tpu.iota {dimensions = array<i32: 1>} : vector<1x768xi32>
    %c95_i32 = arith.constant 95 : i32
    %1 = vector.broadcast %c95_i32 : i32 to vector<1x768xi32>
    %2 = arith.subi %0, %1 : vector<1x768xi32>
    %c31_i32 = arith.constant 31 : i32
    %3 = vector.broadcast %c31_i32 : i32 to vector<1x768xi32>
    %4 = arith.andi %2, %3 : vector<1x768xi32>
    %c32_i32 = arith.constant 32 : i32
    %5 = vector.broadcast %c32_i32 : i32 to vector<1x768xi32>
    %6 = arith.cmpi sge, %2, %5 : vector<1x768xi32>
    %c544_i32 = arith.constant 544 : i32
    %7 = vector.broadcast %c544_i32 : i32 to vector<1x768xi32>
    %8 = arith.cmpi slt, %2, %7 : vector<1x768xi32>
    %9 = arith.andi %6, %8 : vector<1x768xi1>
    %c1_i32 = arith.constant 1 : i32
    %10 = vector.broadcast %c1_i32 : i32 to vector<1x768xi32>
    %11 = arith.cmpi sge, %4, %10 : vector<1x768xi32>
    %12 = arith.andi %9, %11 : vector<1x768xi1>
    %c16_i32 = arith.constant 16 : i32
    %13 = vector.broadcast %c16_i32 : i32 to vector<1x768xi32>
    %14 = arith.cmpi sle, %4, %13 : vector<1x768xi32>
    %15 = arith.andi %12, %14 : vector<1x768xi1>
    %c0 = arith.constant 0 : index
    %c0_0 = arith.constant 0 : index
    %c0_1 = arith.constant 0 : index
    %16 = vector.load %arg1[%c0, %c0_0, %c0_1] : memref<2x8x768xbf16, #tpu.memory_space<vmem>>, vector<1x8x768xbf16>
    %17 = vector.shape_cast %16 : vector<1x8x768xbf16> to vector<8x768xbf16>
    %c0_2 = arith.constant 0 : index
    %c0_3 = arith.constant 0 : index
    %18 = vector.load %arg3[%c0_2, %c0_3] : memref<8x1xbf16, #tpu.memory_space<vmem>>, vector<8x1xbf16>
    %19 = vector.broadcast %18 : vector<8x1xbf16> to vector<8x768xbf16>
    %20 = arith.mulf %17, %19 : vector<8x768xbf16>
    %c0_4 = arith.constant 0 : index
    %c0_5 = arith.constant 0 : index
    %21 = vector.load %arg4[%c0_4, %c0_5] : memref<8x1xbf16, #tpu.memory_space<vmem>>, vector<8x1xbf16>
    %22 = vector.broadcast %21 : vector<8x1xbf16> to vector<8x768xbf16>
    %23 = arith.addf %20, %22 : vector<8x768xbf16>
    %cst = arith.constant 0.000000e+00 : bf16
    %24 = vector.broadcast %cst : bf16 to vector<8x768xbf16>
    %25 = arith.maximumf %23, %24 : vector<8x768xbf16>
    %cst_6 = arith.constant 0.000000e+00 : bf16
    %26 = vector.broadcast %cst_6 : bf16 to vector<8x768xbf16>
    %27 = vector.shape_cast %15 : vector<1x768xi1> to vector<1x768xi1>
    %28 = vector.broadcast %27 : vector<1x768xi1> to vector<8x768xi1>
    %29 = arith.select %28, %25, %26 : vector<8x768xi1>, vector<8x768xbf16>
    %30 = vector.extract_strided_slice %29 {offsets = [0, 95], sizes = [8, 512], strides = [1, 1]} : vector<8x768xbf16> to vector<8x512xbf16>
    %c0_7 = arith.constant 0 : index
    %c0_8 = arith.constant 0 : index
    %31 = vector.load %arg7[%c0_7, %c0_8] : memref<72x1024xbf16, #tpu.memory_space<vmem>>, vector<8x512xbf16>
    tpu.vector_store %arg7[%c0_7, %c0_8], %30 {strides = array<i32>} : memref<72x1024xbf16, #tpu.memory_space<vmem>>, vector<8x512xbf16>,
    %32 = vector.extract_strided_slice %29 {offsets = [0, 96], sizes = [8, 512], strides = [1, 1]} : vector<8x768xbf16> to vector<8x512xbf16>
    %c8 = arith.constant 8 : index
    %c0_9 = arith.constant 0 : index
    %33 = vector.load %arg7[%c8, %c0_9] : memref<72x1024xbf16, #tpu.memory_space<vmem>>, vector<8x512xbf16>
    tpu.vector_store %arg7[%c8, %c0_9], %32 {strides = array<i32>} : memref<72x1024xbf16, #tpu.memory_space<vmem>>, vector<8x512xbf16>,
    %34 = vector.extract_strided_slice %29 {offsets = [0, 97], sizes = [8, 512], strides = [1, 1]} : vector<8x768xbf16> to vector<8x512xbf16>
    %c16 = arith.constant 16 : index
    %c0_10 = arith.constant 0 : index
    %35 = vector.load %arg7[%c16, %c0_10] : memref<72x1024xbf16, #tpu.memory_space<vmem>>, vector<8x512xbf16>
    tpu.vector_store %arg7[%c16, %c0_10], %34 {strides = array<i32>} : memref<72x1024xbf16, #tpu.memory_space<vmem>>, vector<8x512xbf16>,
    %36 = vector.extract_strided_slice %29 {offsets = [0, 127], sizes = [8, 512], strides = [1, 1]} : vector<8x768xbf16> to vector<8x512xbf16>
    %c24 = arith.constant 24 : index
    %c0_11 = arith.constant 0 : index
    %37 = vector.load %arg7[%c24, %c0_11] : memref<72x1024xbf16, #tpu.memory_space<vmem>>, vector<8x512xbf16>
    tpu.vector_store %arg7[%c24, %c0_11], %36 {strides = array<i32>} : memref<72x1024xbf16, #tpu.memory_space<vmem>>, vector<8x512xbf16>,
    %38 = vector.extract_strided_slice %29 {offsets = [0, 128], sizes = [8, 512], strides = [1, 1]} : vector<8x768xbf16> to vector<8x512xbf16>
    %c32 = arith.constant 32 : index
    %c0_12 = arith.constant 0 : index
    %39 = vector.load %arg7[%c32, %c0_12] : memref<72x1024xbf16, #tpu.memory_space<vmem>>, vector<8x512xbf16>
    tpu.vector_store %arg7[%c32, %c0_12], %38 {strides = array<i32>} : memref<72x1024xbf16, #tpu.memory_space<vmem>>, vector<8x512xbf16>,
    %40 = vector.extract_strided_slice %29 {offsets = [0, 129], sizes = [8, 512], strides = [1, 1]} : vector<8x768xbf16> to vector<8x512xbf16>
    %c40 = arith.constant 40 : index
    %c0_13 = arith.constant 0 : index
    %41 = vector.load %arg7[%c40, %c0_13] : memref<72x1024xbf16, #tpu.memory_space<vmem>>, vector<8x512xbf16>
    tpu.vector_store %arg7[%c40, %c0_13], %40 {strides = array<i32>} : memref<72x1024xbf16, #tpu.memory_space<vmem>>, vector<8x512xbf16>,
    %42 = vector.extract_strided_slice %29 {offsets = [0, 159], sizes = [8, 512], strides = [1, 1]} : vector<8x768xbf16> to vector<8x512xbf16>
    %c48 = arith.constant 48 : index
    %c0_14 = arith.constant 0 : index
    %43 = vector.load %arg7[%c48, %c0_14] : memref<72x1024xbf16, #tpu.memory_space<vmem>>, vector<8x512xbf16>
    tpu.vector_store %arg7[%c48, %c0_14], %42 {strides = array<i32>} : memref<72x1024xbf16, #tpu.memory_space<vmem>>, vector<8x512xbf16>,
    %44 = vector.extract_strided_slice %29 {offsets = [0, 160], sizes = [8, 512], strides = [1, 1]} : vector<8x768xbf16> to vector<8x512xbf16>
    %c56 = arith.constant 56 : index
    %c0_15 = arith.constant 0 : index
    %45 = vector.load %arg7[%c56, %c0_15] : memref<72x1024xbf16, #tpu.memory_space<vmem>>, vector<8x512xbf16>
    tpu.vector_store %arg7[%c56, %c0_15], %44 {strides = array<i32>} : memref<72x1024xbf16, #tpu.memory_space<vmem>>, vector<8x512xbf16>,
    %46 = vector.extract_strided_slice %29 {offsets = [0, 161], sizes = [8, 512], strides = [1, 1]} : vector<8x768xbf16> to vector<8x512xbf16>
    %c64 = arith.constant 64 : index
    %c0_16 = arith.constant 0 : index
    %47 = vector.load %arg7[%c64, %c0_16] : memref<72x1024xbf16, #tpu.memory_space<vmem>>, vector<8x512xbf16>
    tpu.vector_store %arg7[%c64, %c0_16], %46 {strides = array<i32>} : memref<72x1024xbf16, #tpu.memory_space<vmem>>, vector<8x512xbf16>,
    %c1 = arith.constant 1 : index
    %c0_17 = arith.constant 0 : index
    %c0_18 = arith.constant 0 : index
    %48 = vector.load %arg1[%c1, %c0_17, %c0_18] : memref<2x8x768xbf16, #tpu.memory_space<vmem>>, vector<1x8x768xbf16>
    %49 = vector.shape_cast %48 : vector<1x8x768xbf16> to vector<8x768xbf16>
    %c0_19 = arith.constant 0 : index
    %c0_20 = arith.constant 0 : index
    %50 = vector.load %arg3[%c0_19, %c0_20] : memref<8x1xbf16, #tpu.memory_space<vmem>>, vector<8x1xbf16>
    %51 = vector.broadcast %50 : vector<8x1xbf16> to vector<8x768xbf16>
    %52 = arith.mulf %49, %51 : vector<8x768xbf16>
    %c0_21 = arith.constant 0 : index
    %c0_22 = arith.constant 0 : index
    %53 = vector.load %arg4[%c0_21, %c0_22] : memref<8x1xbf16, #tpu.memory_space<vmem>>, vector<8x1xbf16>
    %54 = vector.broadcast %53 : vector<8x1xbf16> to vector<8x768xbf16>
    %55 = arith.addf %52, %54 : vector<8x768xbf16>
    %cst_23 = arith.constant 0.000000e+00 : bf16
    %56 = vector.broadcast %cst_23 : bf16 to vector<8x768xbf16>
    %57 = arith.maximumf %55, %56 : vector<8x768xbf16>
    %cst_24 = arith.constant 0.000000e+00 : bf16
    %58 = vector.broadcast %cst_24 : bf16 to vector<8x768xbf16>
    %59 = vector.shape_cast %15 : vector<1x768xi1> to vector<1x768xi1>
    %60 = vector.broadcast %59 : vector<1x768xi1> to vector<8x768xi1>
    %61 = arith.select %60, %57, %58 : vector<8x768xi1>, vector<8x768xbf16>
    %62 = vector.extract_strided_slice %61 {offsets = [0, 95], sizes = [8, 512], strides = [1, 1]} : vector<8x768xbf16> to vector<8x512xbf16>
    %c0_25 = arith.constant 0 : index
    %c512 = arith.constant 512 : index
    %63 = vector.load %arg7[%c0_25, %c512] : memref<72x1024xbf16, #tpu.memory_space<vmem>>, vector<8x512xbf16>
    tpu.vector_store %arg7[%c0_25, %c512], %62 {strides = array<i32>} : memref<72x1024xbf16, #tpu.memory_space<vmem>>, vector<8x512xbf16>,
    %64 = vector.extract_strided_slice %61 {offsets = [0, 96], sizes = [8, 512], strides = [1, 1]} : vector<8x768xbf16> to vector<8x512xbf16>
    %c8_26 = arith.constant 8 : index
    %c512_27 = arith.constant 512 : index
    %65 = vector.load %arg7[%c8_26, %c512_27] : memref<72x1024xbf16, #tpu.memory_space<vmem>>, vector<8x512xbf16>
    tpu.vector_store %arg7[%c8_26, %c512_27], %64 {strides = array<i32>} : memref<72x1024xbf16, #tpu.memory_space<vmem>>, vector<8x512xbf16>,
    %66 = vector.extract_strided_slice %61 {offsets = [0, 97], sizes = [8, 512], strides = [1, 1]} : vector<8x768xbf16> to vector<8x512xbf16>
    %c16_28 = arith.constant 16 : index
    %c512_29 = arith.constant 512 : index
    %67 = vector.load %arg7[%c16_28, %c512_29] : memref<72x1024xbf16, #tpu.memory_space<vmem>>, vector<8x512xbf16>
    tpu.vector_store %arg7[%c16_28, %c512_29], %66 {strides = array<i32>} : memref<72x1024xbf16, #tpu.memory_space<vmem>>, vector<8x512xbf16>,
    %68 = vector.extract_strided_slice %61 {offsets = [0, 127], sizes = [8, 512], strides = [1, 1]} : vector<8x768xbf16> to vector<8x512xbf16>
    %c24_30 = arith.constant 24 : index
    %c512_31 = arith.constant 512 : index
    %69 = vector.load %arg7[%c24_30, %c512_31] : memref<72x1024xbf16, #tpu.memory_space<vmem>>, vector<8x512xbf16>
    tpu.vector_store %arg7[%c24_30, %c512_31], %68 {strides = array<i32>} : memref<72x1024xbf16, #tpu.memory_space<vmem>>, vector<8x512xbf16>,
    %70 = vector.extract_strided_slice %61 {offsets = [0, 128], sizes = [8, 512], strides = [1, 1]} : vector<8x768xbf16> to vector<8x512xbf16>
    %c32_32 = arith.constant 32 : index
    %c512_33 = arith.constant 512 : index
    %71 = vector.load %arg7[%c32_32, %c512_33] : memref<72x1024xbf16, #tpu.memory_space<vmem>>, vector<8x512xbf16>
    tpu.vector_store %arg7[%c32_32, %c512_33], %70 {strides = array<i32>} : memref<72x1024xbf16, #tpu.memory_space<vmem>>, vector<8x512xbf16>,
    %72 = vector.extract_strided_slice %61 {offsets = [0, 129], sizes = [8, 512], strides = [1, 1]} : vector<8x768xbf16> to vector<8x512xbf16>
    %c40_34 = arith.constant 40 : index
    %c512_35 = arith.constant 512 : index
    %73 = vector.load %arg7[%c40_34, %c512_35] : memref<72x1024xbf16, #tpu.memory_space<vmem>>, vector<8x512xbf16>
    tpu.vector_store %arg7[%c40_34, %c512_35], %72 {strides = array<i32>} : memref<72x1024xbf16, #tpu.memory_space<vmem>>, vector<8x512xbf16>,
    %74 = vector.extract_strided_slice %61 {offsets = [0, 159], sizes = [8, 512], strides = [1, 1]} : vector<8x768xbf16> to vector<8x512xbf16>
    %c48_36 = arith.constant 48 : index
    %c512_37 = arith.constant 512 : index
    %75 = vector.load %arg7[%c48_36, %c512_37] : memref<72x1024xbf16, #tpu.memory_space<vmem>>, vector<8x512xbf16>
    tpu.vector_store %arg7[%c48_36, %c512_37], %74 {strides = array<i32>} : memref<72x1024xbf16, #tpu.memory_space<vmem>>, vector<8x512xbf16>,
    %76 = vector.extract_strided_slice %61 {offsets = [0, 160], sizes = [8, 512], strides = [1, 1]} : vector<8x768xbf16> to vector<8x512xbf16>
    %c56_38 = arith.constant 56 : index
    %c512_39 = arith.constant 512 : index
    %77 = vector.load %arg7[%c56_38, %c512_39] : memref<72x1024xbf16, #tpu.memory_space<vmem>>, vector<8x512xbf16>
    tpu.vector_store %arg7[%c56_38, %c512_39], %76 {strides = array<i32>} : memref<72x1024xbf16, #tpu.memory_space<vmem>>, vector<8x512xbf16>,
    %78 = vector.extract_strided_slice %61 {offsets = [0, 161], sizes = [8, 512], strides = [1, 1]} : vector<8x768xbf16> to vector<8x512xbf16>
    %c64_40 = arith.constant 64 : index
    %c512_41 = arith.constant 512 : index
    %79 = vector.load %arg7[%c64_40, %c512_41] : memref<72x1024xbf16, #tpu.memory_space<vmem>>, vector<8x512xbf16>
    tpu.vector_store %arg7[%c64_40, %c512_41], %78 {strides = array<i32>} : memref<72x1024xbf16, #tpu.memory_space<vmem>>, vector<8x512xbf16>,
    %c0_42 = arith.constant 0 : index
    %c0_43 = arith.constant 0 : index
    %80 = vector.load %arg2[%c0_42, %c0_43] : memref<8x72xbf16, #tpu.memory_space<vmem>>, vector<8x72xbf16>
    %c0_44 = arith.constant 0 : index
    %c0_45 = arith.constant 0 : index
    %81 = vector.load %arg7[%c0_44, %c0_45] : memref<72x1024xbf16, #tpu.memory_space<vmem>>, vector<72x1024xbf16>
    %cst_46 = arith.constant dense<0.000000e+00> : vector<8x1024xf32>
    %82 = tpu.matmul %80, %81, %cst_46 {dimension_numbers = #tpu.dot_dimension_numbers<[1], [0], [0], [1], [0, 0, 1, 1], [], []>} : vector<8x72xbf16>, vector<72x1024xbf16>, vector<8x1024xf32> -> vector<8x1024xf32>
    %83 = tpu.iota {dimensions = array<i32: 1>} : vector<1x1024xi32>
    %c31_i32_47 = arith.constant 31 : i32
    %84 = vector.broadcast %c31_i32_47 : i32 to vector<1x1024xi32>
    %85 = arith.andi %83, %84 : vector<1x1024xi32>
    %c16_i32_48 = arith.constant 16 : i32
    %86 = vector.broadcast %c16_i32_48 : i32 to vector<1x1024xi32>
    %87 = arith.cmpi slt, %85, %86 : vector<1x1024xi32>
    %cst_49 = arith.constant 0.000000e+00 : f32
    %88 = vector.broadcast %cst_49 : f32 to vector<8x1024xf32>
    %89 = vector.shape_cast %87 : vector<1x1024xi1> to vector<1x1024xi1>
    %90 = vector.broadcast %89 : vector<1x1024xi1> to vector<8x1024xi1>
    %91 = arith.select %90, %82, %88 : vector<8x1024xi1>, vector<8x1024xf32>
    %cst_50 = arith.constant dense<0.000000e+00> : vector<8xf32>
    %92 = vector.multi_reduction <add>, %91, %cst_50 [1] : vector<8x1024xf32> to vector<8xf32>
    %93 = vector.shape_cast %92 : vector<8xf32> to vector<8x1xf32>
    %94 = arith.mulf %91, %91 : vector<8x1024xf32>
    %cst_51 = arith.constant dense<0.000000e+00> : vector<8xf32>
    %95 = vector.multi_reduction <add>, %94, %cst_51 [1] : vector<8x1024xf32> to vector<8xf32>
    %96 = vector.shape_cast %95 : vector<8xf32> to vector<8x1xf32>
    %97 = tpu.concatenate %93, %96 in 1 : vector<8x1xf32>, vector<8x1xf32> -> vector<8x2xf32>
    %c0_52 = arith.constant 0 : index
    %c0_53 = arith.constant 0 : index
    %c0_54 = arith.constant 0 : index
    %98 = vector.load %arg6[%c0_52, %c0_53, %c0_54] : memref<1x8x2xf32, #tpu.memory_space<vmem>>, vector<1x8x2xf32>
    %99 = vector.shape_cast %98 : vector<1x8x2xf32> to vector<8x2xf32>
    %100 = vector.shape_cast %97 : vector<8x2xf32> to vector<1x8x2xf32>
    tpu.vector_store %arg6[%c0_52, %c0_53, %c0_54], %100 {strides = array<i32>} : memref<1x8x2xf32, #tpu.memory_space<vmem>>, vector<1x8x2xf32>,
    %cst_55 = arith.constant 0.000000e+00 : bf16
    %101 = vector.broadcast %cst_55 : bf16 to vector<8x128xbf16>
    %cst_56 = arith.constant 0.000000e+00 : bf16
    %102 = vector.broadcast %cst_56 : bf16 to vector<8x128xbf16>
    %c0_57 = arith.constant 0 : index
    %c0_58 = arith.constant 0 : index
    %c0_59 = arith.constant 0 : index
    %103 = vector.load %arg5[%c0_57, %c0_58, %c0_59] : memref<2x8x768xbf16, #tpu.memory_space<vmem>>, vector<1x8x128xbf16>
    %104 = vector.shape_cast %103 : vector<1x8x128xbf16> to vector<8x128xbf16>
    %105 = vector.shape_cast %101 : vector<8x128xbf16> to vector<1x8x128xbf16>
    tpu.vector_store %arg5[%c0_57, %c0_58, %c0_59], %105 {strides = array<i32>} : memref<2x8x768xbf16, #tpu.memory_space<vmem>>, vector<1x8x128xbf16>,
    %106 = vector.extract_strided_slice %91 {offsets = [0, 0], sizes = [8, 512], strides = [1, 1]} : vector<8x1024xf32> to vector<8x512xf32>
    %107 = arith.truncf %106 : vector<8x512xf32> to vector<8x512xbf16>
    %c0_60 = arith.constant 0 : index
    %c0_61 = arith.constant 0 : index
    %c128 = arith.constant 128 : index
    %108 = vector.load %arg5[%c0_60, %c0_61, %c128] : memref<2x8x768xbf16, #tpu.memory_space<vmem>>, vector<1x8x512xbf16>
    %109 = vector.shape_cast %108 : vector<1x8x512xbf16> to vector<8x512xbf16>
    %110 = vector.shape_cast %107 : vector<8x512xbf16> to vector<1x8x512xbf16>
    tpu.vector_store %arg5[%c0_60, %c0_61, %c128], %110 {strides = array<i32>} : memref<2x8x768xbf16, #tpu.memory_space<vmem>>, vector<1x8x512xbf16>,
    %c0_62 = arith.constant 0 : index
    %c0_63 = arith.constant 0 : index
    %c640 = arith.constant 640 : index
    %111 = vector.load %arg5[%c0_62, %c0_63, %c640] : memref<2x8x768xbf16, #tpu.memory_space<vmem>>, vector<1x8x128xbf16>
    %112 = vector.shape_cast %111 : vector<1x8x128xbf16> to vector<8x128xbf16>
    %113 = vector.shape_cast %102 : vector<8x128xbf16> to vector<1x8x128xbf16>
    tpu.vector_store %arg5[%c0_62, %c0_63, %c640], %113 {strides = array<i32>} : memref<2x8x768xbf16, #tpu.memory_space<vmem>>, vector<1x8x128xbf16>,
    %c1_64 = arith.constant 1 : index
    %c0_65 = arith.constant 0 : index
    %c0_66 = arith.constant 0 : index
    %114 = vector.load %arg5[%c1_64, %c0_65, %c0_66] : memref<2x8x768xbf16, #tpu.memory_space<vmem>>, vector<1x8x128xbf16>
    %115 = vector.shape_cast %114 : vector<1x8x128xbf16> to vector<8x128xbf16>
    %116 = vector.shape_cast %101 : vector<8x128xbf16> to vector<1x8x128xbf16>
    tpu.vector_store %arg5[%c1_64, %c0_65, %c0_66], %116 {strides = array<i32>} : memref<2x8x768xbf16, #tpu.memory_space<vmem>>, vector<1x8x128xbf16>,
    %117 = vector.extract_strided_slice %91 {offsets = [0, 512], sizes = [8, 512], strides = [1, 1]} : vector<8x1024xf32> to vector<8x512xf32>
    %118 = arith.truncf %117 : vector<8x512xf32> to vector<8x512xbf16>
    %c1_67 = arith.constant 1 : index
    %c0_68 = arith.constant 0 : index
    %c128_69 = arith.constant 128 : index
    %119 = vector.load %arg5[%c1_67, %c0_68, %c128_69] : memref<2x8x768xbf16, #tpu.memory_space<vmem>>, vector<1x8x512xbf16>
    %120 = vector.shape_cast %119 : vector<1x8x512xbf16> to vector<8x512xbf16>
    %121 = vector.shape_cast %118 : vector<8x512xbf16> to vector<1x8x512xbf16>
    tpu.vector_store %arg5[%c1_67, %c0_68, %c128_69], %121 {strides = array<i32>} : memref<2x8x768xbf16, #tpu.memory_space<vmem>>, vector<1x8x512xbf16>,
    %c1_70 = arith.constant 1 : index
    %c0_71 = arith.constant 0 : index
    %c640_72 = arith.constant 640 : index
    %122 = vector.load %arg5[%c1_70, %c0_71, %c640_72] : memref<2x8x768xbf16, #tpu.memory_space<vmem>>, vector<1x8x128xbf16>
    %123 = vector.shape_cast %122 : vector<1x8x128xbf16> to vector<8x128xbf16>
    %124 = vector.shape_cast %102 : vector<8x128xbf16> to vector<1x8x128xbf16>
    tpu.vector_store %arg5[%c1_70, %c0_71, %c640_72], %124 {strides = array<i32>} : memref<2x8x768xbf16, #tpu.memory_space<vmem>>, vector<1x8x128xbf16>,
    return
  }
  func.func @transform_0(%arg0: i32) -> (i32, i32, i32) {
    %c0_i32 = arith.constant 0 : i32
    %c0_i32_0 = arith.constant 0 : i32
    %c0_i32_1 = arith.constant 0 : i32
    return %arg0, %c0_i32, %c0_i32_0 : i32, i32, i32
  }
  func.func @transform_1(%arg0: i32) -> (i32, i32) {
    %c0_i32 = arith.constant 0 : i32
    %c0_i32_0 = arith.constant 0 : i32
    %c0_i32_1 = arith.constant 0 : i32
    return %c0_i32, %c0_i32_0 : i32, i32
  }
  func.func @transform_2(%arg0: i32) -> (i32, i32) {
    %c0_i32 = arith.constant 0 : i32
    %c0_i32_0 = arith.constant 0 : i32
    %c0_i32_1 = arith.constant 0 : i32
    return %c0_i32, %c0_i32_0 : i32, i32
  }
  func.func @transform_3(%arg0: i32) -> (i32, i32) {
    %c0_i32 = arith.constant 0 : i32
    %c0_i32_0 = arith.constant 0 : i32
    %c0_i32_1 = arith.constant 0 : i32
    return %c0_i32, %c0_i32_0 : i32, i32
  }
  func.func @transform_4(%arg0: i32) -> (i32, i32, i32) {
    %c0_i32 = arith.constant 0 : i32
    %c0_i32_0 = arith.constant 0 : i32
    %c0_i32_1 = arith.constant 0 : i32
    return %arg0, %c0_i32, %c0_i32_0 : i32, i32, i32
  }
  func.func @transform_5(%arg0: i32) -> (i32, i32, i32) {
    %c0_i32 = arith.constant 0 : i32
    %c0_i32_0 = arith.constant 0 : i32
    %c0_i32_1 = arith.constant 0 : i32
    return %arg0, %c0_i32, %c0_i32_0 : i32, i32, i32
  }
}

module attributes {stable_mosaic.version = 11 : i64} {
  func.func @kernel(%arg0: i32, %arg1: memref<2x8x768xbf16, #tpu.memory_space<vmem>>, %arg2: memref<8x72xbf16, #tpu.memory_space<vmem>>, %arg3: memref<2x8x768xbf16, #tpu.memory_space<vmem>>, %arg4: memref<1x8x2xf32, #tpu.memory_space<vmem>>, %arg5: memref<72x1024xbf16, #tpu.memory_space<vmem>>) attributes {dimension_semantics = [#tpu.dimension_semantics<parallel>], iteration_bounds = array<i64: 1>, scalar_prefetch = 0 : i64, scratch_operands = 1 : i64, tpu.core_type = #tpu.core_type<tc>, window_params = [{transform_indices = @transform_0, window_bounds = array<i64: 2, 8, 768>}, {pipeline_mode = #tpu.pipeline_mode<synchronous>, transform_indices = @transform_1, window_bounds = array<i64: 8, 72>}, {transform_indices = @transform_2, window_bounds = array<i64: 2, 8, 768>}, {transform_indices = @transform_3, window_bounds = array<i64: 1, 8, 2>}]} {
    %c0 = arith.constant 0 : index
    %c0_0 = arith.constant 0 : index
    %c0_1 = arith.constant 0 : index
    %0 = vector.load %arg1[%c0, %c0_0, %c0_1] : memref<2x8x768xbf16, #tpu.memory_space<vmem>>, vector<1x8x768xbf16>
    %1 = vector.shape_cast %0 : vector<1x8x768xbf16> to vector<8x768xbf16>
    %2 = vector.extract_strided_slice %1 {offsets = [0, 95], sizes = [8, 512], strides = [1, 1]} : vector<8x768xbf16> to vector<8x512xbf16>
    %c0_2 = arith.constant 0 : index
    %c0_3 = arith.constant 0 : index
    %3 = vector.load %arg5[%c0_2, %c0_3] : memref<72x1024xbf16, #tpu.memory_space<vmem>>, vector<8x512xbf16>
    tpu.vector_store %arg5[%c0_2, %c0_3], %2 {strides = array<i32>} : memref<72x1024xbf16, #tpu.memory_space<vmem>>, vector<8x512xbf16>,
    %4 = vector.extract_strided_slice %1 {offsets = [0, 96], sizes = [8, 512], strides = [1, 1]} : vector<8x768xbf16> to vector<8x512xbf16>
    %c8 = arith.constant 8 : index
    %c0_4 = arith.constant 0 : index
    %5 = vector.load %arg5[%c8, %c0_4] : memref<72x1024xbf16, #tpu.memory_space<vmem>>, vector<8x512xbf16>
    tpu.vector_store %arg5[%c8, %c0_4], %4 {strides = array<i32>} : memref<72x1024xbf16, #tpu.memory_space<vmem>>, vector<8x512xbf16>,
    %6 = vector.extract_strided_slice %1 {offsets = [0, 97], sizes = [8, 512], strides = [1, 1]} : vector<8x768xbf16> to vector<8x512xbf16>
    %c16 = arith.constant 16 : index
    %c0_5 = arith.constant 0 : index
    %7 = vector.load %arg5[%c16, %c0_5] : memref<72x1024xbf16, #tpu.memory_space<vmem>>, vector<8x512xbf16>
    tpu.vector_store %arg5[%c16, %c0_5], %6 {strides = array<i32>} : memref<72x1024xbf16, #tpu.memory_space<vmem>>, vector<8x512xbf16>,
    %8 = vector.extract_strided_slice %1 {offsets = [0, 127], sizes = [8, 512], strides = [1, 1]} : vector<8x768xbf16> to vector<8x512xbf16>
    %c24 = arith.constant 24 : index
    %c0_6 = arith.constant 0 : index
    %9 = vector.load %arg5[%c24, %c0_6] : memref<72x1024xbf16, #tpu.memory_space<vmem>>, vector<8x512xbf16>
    tpu.vector_store %arg5[%c24, %c0_6], %8 {strides = array<i32>} : memref<72x1024xbf16, #tpu.memory_space<vmem>>, vector<8x512xbf16>,
    %10 = vector.extract_strided_slice %1 {offsets = [0, 128], sizes = [8, 512], strides = [1, 1]} : vector<8x768xbf16> to vector<8x512xbf16>
    %c32 = arith.constant 32 : index
    %c0_7 = arith.constant 0 : index
    %11 = vector.load %arg5[%c32, %c0_7] : memref<72x1024xbf16, #tpu.memory_space<vmem>>, vector<8x512xbf16>
    tpu.vector_store %arg5[%c32, %c0_7], %10 {strides = array<i32>} : memref<72x1024xbf16, #tpu.memory_space<vmem>>, vector<8x512xbf16>,
    %12 = vector.extract_strided_slice %1 {offsets = [0, 129], sizes = [8, 512], strides = [1, 1]} : vector<8x768xbf16> to vector<8x512xbf16>
    %c40 = arith.constant 40 : index
    %c0_8 = arith.constant 0 : index
    %13 = vector.load %arg5[%c40, %c0_8] : memref<72x1024xbf16, #tpu.memory_space<vmem>>, vector<8x512xbf16>
    tpu.vector_store %arg5[%c40, %c0_8], %12 {strides = array<i32>} : memref<72x1024xbf16, #tpu.memory_space<vmem>>, vector<8x512xbf16>,
    %14 = vector.extract_strided_slice %1 {offsets = [0, 159], sizes = [8, 512], strides = [1, 1]} : vector<8x768xbf16> to vector<8x512xbf16>
    %c48 = arith.constant 48 : index
    %c0_9 = arith.constant 0 : index
    %15 = vector.load %arg5[%c48, %c0_9] : memref<72x1024xbf16, #tpu.memory_space<vmem>>, vector<8x512xbf16>
    tpu.vector_store %arg5[%c48, %c0_9], %14 {strides = array<i32>} : memref<72x1024xbf16, #tpu.memory_space<vmem>>, vector<8x512xbf16>,
    %16 = vector.extract_strided_slice %1 {offsets = [0, 160], sizes = [8, 512], strides = [1, 1]} : vector<8x768xbf16> to vector<8x512xbf16>
    %c56 = arith.constant 56 : index
    %c0_10 = arith.constant 0 : index
    %17 = vector.load %arg5[%c56, %c0_10] : memref<72x1024xbf16, #tpu.memory_space<vmem>>, vector<8x512xbf16>
    tpu.vector_store %arg5[%c56, %c0_10], %16 {strides = array<i32>} : memref<72x1024xbf16, #tpu.memory_space<vmem>>, vector<8x512xbf16>,
    %18 = vector.extract_strided_slice %1 {offsets = [0, 161], sizes = [8, 512], strides = [1, 1]} : vector<8x768xbf16> to vector<8x512xbf16>
    %c64 = arith.constant 64 : index
    %c0_11 = arith.constant 0 : index
    %19 = vector.load %arg5[%c64, %c0_11] : memref<72x1024xbf16, #tpu.memory_space<vmem>>, vector<8x512xbf16>
    tpu.vector_store %arg5[%c64, %c0_11], %18 {strides = array<i32>} : memref<72x1024xbf16, #tpu.memory_space<vmem>>, vector<8x512xbf16>,
    %c1 = arith.constant 1 : index
    %c0_12 = arith.constant 0 : index
    %c0_13 = arith.constant 0 : index
    %20 = vector.load %arg1[%c1, %c0_12, %c0_13] : memref<2x8x768xbf16, #tpu.memory_space<vmem>>, vector<1x8x768xbf16>
    %21 = vector.shape_cast %20 : vector<1x8x768xbf16> to vector<8x768xbf16>
    %22 = vector.extract_strided_slice %21 {offsets = [0, 95], sizes = [8, 512], strides = [1, 1]} : vector<8x768xbf16> to vector<8x512xbf16>
    %c0_14 = arith.constant 0 : index
    %c512 = arith.constant 512 : index
    %23 = vector.load %arg5[%c0_14, %c512] : memref<72x1024xbf16, #tpu.memory_space<vmem>>, vector<8x512xbf16>
    tpu.vector_store %arg5[%c0_14, %c512], %22 {strides = array<i32>} : memref<72x1024xbf16, #tpu.memory_space<vmem>>, vector<8x512xbf16>,
    %24 = vector.extract_strided_slice %21 {offsets = [0, 96], sizes = [8, 512], strides = [1, 1]} : vector<8x768xbf16> to vector<8x512xbf16>
    %c8_15 = arith.constant 8 : index
    %c512_16 = arith.constant 512 : index
    %25 = vector.load %arg5[%c8_15, %c512_16] : memref<72x1024xbf16, #tpu.memory_space<vmem>>, vector<8x512xbf16>
    tpu.vector_store %arg5[%c8_15, %c512_16], %24 {strides = array<i32>} : memref<72x1024xbf16, #tpu.memory_space<vmem>>, vector<8x512xbf16>,
    %26 = vector.extract_strided_slice %21 {offsets = [0, 97], sizes = [8, 512], strides = [1, 1]} : vector<8x768xbf16> to vector<8x512xbf16>
    %c16_17 = arith.constant 16 : index
    %c512_18 = arith.constant 512 : index
    %27 = vector.load %arg5[%c16_17, %c512_18] : memref<72x1024xbf16, #tpu.memory_space<vmem>>, vector<8x512xbf16>
    tpu.vector_store %arg5[%c16_17, %c512_18], %26 {strides = array<i32>} : memref<72x1024xbf16, #tpu.memory_space<vmem>>, vector<8x512xbf16>,
    %28 = vector.extract_strided_slice %21 {offsets = [0, 127], sizes = [8, 512], strides = [1, 1]} : vector<8x768xbf16> to vector<8x512xbf16>
    %c24_19 = arith.constant 24 : index
    %c512_20 = arith.constant 512 : index
    %29 = vector.load %arg5[%c24_19, %c512_20] : memref<72x1024xbf16, #tpu.memory_space<vmem>>, vector<8x512xbf16>
    tpu.vector_store %arg5[%c24_19, %c512_20], %28 {strides = array<i32>} : memref<72x1024xbf16, #tpu.memory_space<vmem>>, vector<8x512xbf16>,
    %30 = vector.extract_strided_slice %21 {offsets = [0, 128], sizes = [8, 512], strides = [1, 1]} : vector<8x768xbf16> to vector<8x512xbf16>
    %c32_21 = arith.constant 32 : index
    %c512_22 = arith.constant 512 : index
    %31 = vector.load %arg5[%c32_21, %c512_22] : memref<72x1024xbf16, #tpu.memory_space<vmem>>, vector<8x512xbf16>
    tpu.vector_store %arg5[%c32_21, %c512_22], %30 {strides = array<i32>} : memref<72x1024xbf16, #tpu.memory_space<vmem>>, vector<8x512xbf16>,
    %32 = vector.extract_strided_slice %21 {offsets = [0, 129], sizes = [8, 512], strides = [1, 1]} : vector<8x768xbf16> to vector<8x512xbf16>
    %c40_23 = arith.constant 40 : index
    %c512_24 = arith.constant 512 : index
    %33 = vector.load %arg5[%c40_23, %c512_24] : memref<72x1024xbf16, #tpu.memory_space<vmem>>, vector<8x512xbf16>
    tpu.vector_store %arg5[%c40_23, %c512_24], %32 {strides = array<i32>} : memref<72x1024xbf16, #tpu.memory_space<vmem>>, vector<8x512xbf16>,
    %34 = vector.extract_strided_slice %21 {offsets = [0, 159], sizes = [8, 512], strides = [1, 1]} : vector<8x768xbf16> to vector<8x512xbf16>
    %c48_25 = arith.constant 48 : index
    %c512_26 = arith.constant 512 : index
    %35 = vector.load %arg5[%c48_25, %c512_26] : memref<72x1024xbf16, #tpu.memory_space<vmem>>, vector<8x512xbf16>
    tpu.vector_store %arg5[%c48_25, %c512_26], %34 {strides = array<i32>} : memref<72x1024xbf16, #tpu.memory_space<vmem>>, vector<8x512xbf16>,
    %36 = vector.extract_strided_slice %21 {offsets = [0, 160], sizes = [8, 512], strides = [1, 1]} : vector<8x768xbf16> to vector<8x512xbf16>
    %c56_27 = arith.constant 56 : index
    %c512_28 = arith.constant 512 : index
    %37 = vector.load %arg5[%c56_27, %c512_28] : memref<72x1024xbf16, #tpu.memory_space<vmem>>, vector<8x512xbf16>
    tpu.vector_store %arg5[%c56_27, %c512_28], %36 {strides = array<i32>} : memref<72x1024xbf16, #tpu.memory_space<vmem>>, vector<8x512xbf16>,
    %38 = vector.extract_strided_slice %21 {offsets = [0, 161], sizes = [8, 512], strides = [1, 1]} : vector<8x768xbf16> to vector<8x512xbf16>
    %c64_29 = arith.constant 64 : index
    %c512_30 = arith.constant 512 : index
    %39 = vector.load %arg5[%c64_29, %c512_30] : memref<72x1024xbf16, #tpu.memory_space<vmem>>, vector<8x512xbf16>
    tpu.vector_store %arg5[%c64_29, %c512_30], %38 {strides = array<i32>} : memref<72x1024xbf16, #tpu.memory_space<vmem>>, vector<8x512xbf16>,
    %c0_31 = arith.constant 0 : index
    %c0_32 = arith.constant 0 : index
    %40 = vector.load %arg2[%c0_31, %c0_32] : memref<8x72xbf16, #tpu.memory_space<vmem>>, vector<8x72xbf16>
    %c0_33 = arith.constant 0 : index
    %c0_34 = arith.constant 0 : index
    %41 = vector.load %arg5[%c0_33, %c0_34] : memref<72x1024xbf16, #tpu.memory_space<vmem>>, vector<72x1024xbf16>
    %cst = arith.constant dense<0.000000e+00> : vector<8x1024xf32>
    %42 = tpu.matmul %40, %41, %cst {dimension_numbers = #tpu.dot_dimension_numbers<[1], [0], [0], [1], [0, 0, 1, 1], [], []>} : vector<8x72xbf16>, vector<72x1024xbf16>, vector<8x1024xf32> -> vector<8x1024xf32>
    %43 = tpu.iota {dimensions = array<i32: 1>} : vector<1x1024xi32>
    %c31_i32 = arith.constant 31 : i32
    %44 = vector.broadcast %c31_i32 : i32 to vector<1x1024xi32>
    %45 = arith.andi %43, %44 : vector<1x1024xi32>
    %c16_i32 = arith.constant 16 : i32
    %46 = vector.broadcast %c16_i32 : i32 to vector<1x1024xi32>
    %47 = arith.cmpi slt, %45, %46 : vector<1x1024xi32>
    %cst_35 = arith.constant 0.000000e+00 : f32
    %48 = vector.broadcast %cst_35 : f32 to vector<8x1024xf32>
    %49 = vector.shape_cast %47 : vector<1x1024xi1> to vector<1x1024xi1>
    %50 = vector.broadcast %49 : vector<1x1024xi1> to vector<8x1024xi1>
    %51 = arith.select %50, %42, %48 : vector<8x1024xi1>, vector<8x1024xf32>
    %cst_36 = arith.constant dense<0.000000e+00> : vector<8xf32>
    %52 = vector.multi_reduction <add>, %51, %cst_36 [1] : vector<8x1024xf32> to vector<8xf32>
    %53 = vector.shape_cast %52 : vector<8xf32> to vector<8x1xf32>
    %54 = arith.mulf %51, %51 : vector<8x1024xf32>
    %cst_37 = arith.constant dense<0.000000e+00> : vector<8xf32>
    %55 = vector.multi_reduction <add>, %54, %cst_37 [1] : vector<8x1024xf32> to vector<8xf32>
    %56 = vector.shape_cast %55 : vector<8xf32> to vector<8x1xf32>
    %57 = tpu.concatenate %53, %56 in 1 : vector<8x1xf32>, vector<8x1xf32> -> vector<8x2xf32>
    %c0_38 = arith.constant 0 : index
    %c0_39 = arith.constant 0 : index
    %c0_40 = arith.constant 0 : index
    %58 = vector.load %arg4[%c0_38, %c0_39, %c0_40] : memref<1x8x2xf32, #tpu.memory_space<vmem>>, vector<1x8x2xf32>
    %59 = vector.shape_cast %58 : vector<1x8x2xf32> to vector<8x2xf32>
    %60 = vector.shape_cast %57 : vector<8x2xf32> to vector<1x8x2xf32>
    tpu.vector_store %arg4[%c0_38, %c0_39, %c0_40], %60 {strides = array<i32>} : memref<1x8x2xf32, #tpu.memory_space<vmem>>, vector<1x8x2xf32>,
    %cst_41 = arith.constant 0.000000e+00 : bf16
    %61 = vector.broadcast %cst_41 : bf16 to vector<8x128xbf16>
    %cst_42 = arith.constant 0.000000e+00 : bf16
    %62 = vector.broadcast %cst_42 : bf16 to vector<8x128xbf16>
    %c0_43 = arith.constant 0 : index
    %c0_44 = arith.constant 0 : index
    %c0_45 = arith.constant 0 : index
    %63 = vector.load %arg3[%c0_43, %c0_44, %c0_45] : memref<2x8x768xbf16, #tpu.memory_space<vmem>>, vector<1x8x128xbf16>
    %64 = vector.shape_cast %63 : vector<1x8x128xbf16> to vector<8x128xbf16>
    %65 = vector.shape_cast %61 : vector<8x128xbf16> to vector<1x8x128xbf16>
    tpu.vector_store %arg3[%c0_43, %c0_44, %c0_45], %65 {strides = array<i32>} : memref<2x8x768xbf16, #tpu.memory_space<vmem>>, vector<1x8x128xbf16>,
    %66 = vector.extract_strided_slice %51 {offsets = [0, 0], sizes = [8, 512], strides = [1, 1]} : vector<8x1024xf32> to vector<8x512xf32>
    %67 = arith.truncf %66 : vector<8x512xf32> to vector<8x512xbf16>
    %c0_46 = arith.constant 0 : index
    %c0_47 = arith.constant 0 : index
    %c128 = arith.constant 128 : index
    %68 = vector.load %arg3[%c0_46, %c0_47, %c128] : memref<2x8x768xbf16, #tpu.memory_space<vmem>>, vector<1x8x512xbf16>
    %69 = vector.shape_cast %68 : vector<1x8x512xbf16> to vector<8x512xbf16>
    %70 = vector.shape_cast %67 : vector<8x512xbf16> to vector<1x8x512xbf16>
    tpu.vector_store %arg3[%c0_46, %c0_47, %c128], %70 {strides = array<i32>} : memref<2x8x768xbf16, #tpu.memory_space<vmem>>, vector<1x8x512xbf16>,
    %c0_48 = arith.constant 0 : index
    %c0_49 = arith.constant 0 : index
    %c640 = arith.constant 640 : index
    %71 = vector.load %arg3[%c0_48, %c0_49, %c640] : memref<2x8x768xbf16, #tpu.memory_space<vmem>>, vector<1x8x128xbf16>
    %72 = vector.shape_cast %71 : vector<1x8x128xbf16> to vector<8x128xbf16>
    %73 = vector.shape_cast %62 : vector<8x128xbf16> to vector<1x8x128xbf16>
    tpu.vector_store %arg3[%c0_48, %c0_49, %c640], %73 {strides = array<i32>} : memref<2x8x768xbf16, #tpu.memory_space<vmem>>, vector<1x8x128xbf16>,
    %c1_50 = arith.constant 1 : index
    %c0_51 = arith.constant 0 : index
    %c0_52 = arith.constant 0 : index
    %74 = vector.load %arg3[%c1_50, %c0_51, %c0_52] : memref<2x8x768xbf16, #tpu.memory_space<vmem>>, vector<1x8x128xbf16>
    %75 = vector.shape_cast %74 : vector<1x8x128xbf16> to vector<8x128xbf16>
    %76 = vector.shape_cast %61 : vector<8x128xbf16> to vector<1x8x128xbf16>
    tpu.vector_store %arg3[%c1_50, %c0_51, %c0_52], %76 {strides = array<i32>} : memref<2x8x768xbf16, #tpu.memory_space<vmem>>, vector<1x8x128xbf16>,
    %77 = vector.extract_strided_slice %51 {offsets = [0, 512], sizes = [8, 512], strides = [1, 1]} : vector<8x1024xf32> to vector<8x512xf32>
    %78 = arith.truncf %77 : vector<8x512xf32> to vector<8x512xbf16>
    %c1_53 = arith.constant 1 : index
    %c0_54 = arith.constant 0 : index
    %c128_55 = arith.constant 128 : index
    %79 = vector.load %arg3[%c1_53, %c0_54, %c128_55] : memref<2x8x768xbf16, #tpu.memory_space<vmem>>, vector<1x8x512xbf16>
    %80 = vector.shape_cast %79 : vector<1x8x512xbf16> to vector<8x512xbf16>
    %81 = vector.shape_cast %78 : vector<8x512xbf16> to vector<1x8x512xbf16>
    tpu.vector_store %arg3[%c1_53, %c0_54, %c128_55], %81 {strides = array<i32>} : memref<2x8x768xbf16, #tpu.memory_space<vmem>>, vector<1x8x512xbf16>,
    %c1_56 = arith.constant 1 : index
    %c0_57 = arith.constant 0 : index
    %c640_58 = arith.constant 640 : index
    %82 = vector.load %arg3[%c1_56, %c0_57, %c640_58] : memref<2x8x768xbf16, #tpu.memory_space<vmem>>, vector<1x8x128xbf16>
    %83 = vector.shape_cast %82 : vector<1x8x128xbf16> to vector<8x128xbf16>
    %84 = vector.shape_cast %62 : vector<8x128xbf16> to vector<1x8x128xbf16>
    tpu.vector_store %arg3[%c1_56, %c0_57, %c640_58], %84 {strides = array<i32>} : memref<2x8x768xbf16, #tpu.memory_space<vmem>>, vector<1x8x128xbf16>,
    return
  }
  func.func @transform_0(%arg0: i32) -> (i32, i32, i32) {
    %c0_i32 = arith.constant 0 : i32
    %c0_i32_0 = arith.constant 0 : i32
    %c0_i32_1 = arith.constant 0 : i32
    return %arg0, %c0_i32, %c0_i32_0 : i32, i32, i32
  }
  func.func @transform_1(%arg0: i32) -> (i32, i32) {
    %c0_i32 = arith.constant 0 : i32
    %c0_i32_0 = arith.constant 0 : i32
    %c0_i32_1 = arith.constant 0 : i32
    return %c0_i32, %c0_i32_0 : i32, i32
  }
  func.func @transform_2(%arg0: i32) -> (i32, i32, i32) {
    %c0_i32 = arith.constant 0 : i32
    %c0_i32_0 = arith.constant 0 : i32
    %c0_i32_1 = arith.constant 0 : i32
    return %arg0, %c0_i32, %c0_i32_0 : i32, i32, i32
  }
  func.func @transform_3(%arg0: i32) -> (i32, i32, i32) {
    %c0_i32 = arith.constant 0 : i32
    %c0_i32_0 = arith.constant 0 : i32
    %c0_i32_1 = arith.constant 0 : i32
    return %arg0, %c0_i32, %c0_i32_0 : i32, i32, i32
  }
}

</mosaic_0001>

<bundles_post_ra>
// kernel: conv_block_3_forward.5
= control target key start
LH: loop header
LB: loop body
LE: loop exit
PB: predicated region body
PF: predicated region fallthrough
CT: control target
= control target key end

     0   :  { %v97_v0 = vmov 0   ;;  %s160_s2 = inlined_call_operand.vmem [shape: f32[8,1], index: 2, kind: input, shape index: {}]   ;;  %s161_s1 = inlined_call_operand.vmem [shape: f32[8,1], index: 1, kind: input, shape index: {}]   ;;  %s162_s0 = inlined_call_operand.vmem [shape: bf16[2,8,768], index: 0, kind: input, shape index: {}]   ;;  %s163_s3 = inlined_call_operand.vmem [shape: f32[2,8,512], index: 3, kind: output, shape index: {}]  }
   0x1   :  { %96 = vset.pattern.permute.xlu1 %v97_v0  ;;  %95 = vset.pattern.permute.xlu0 %v97_v0  ;;  %v30_v1 = vld [vmem:[%s160_s2] sm:$0xff]  ;;  %v15_v4 = vld [vmem:[%s162_s0 + $0xc] sm:$0xff] }
   0x2   :  { %v20_v2 = vld [vmem:[%s161_s1] sm:$0xff]  ;;  %33 = vperm.xlu1 %96, %v30_v1   ;;  %v18_v7 = vunpack.c.l.bf16 %v15_v4  ;;  %v19_v8 = vunpack.c.h.bf16 %v15_v4 }
   0x3   :  { %23 = vperm.xlu0 %95, %v20_v2   ;;  %v14_v3 = vld [vmem:[%s162_s0 + $0x4] sm:$0xff]  ;;  %v88_v9 = vld [vmem:[%s162_s0 + $0x1c] sm:$0xff] }
   0x4   :  { %v16_v5 = vunpack.c.l.bf16 %v14_v3  ;;  %v17_v6 = vunpack.c.h.bf16 %v14_v3  ;;  %v89_v10 = vld [vmem:[%s162_s0 + $0x24] sm:$0xff]  ;;  %v51_v17 = vunpack.c.l.bf16 %v88_v9  ;;  %v52_v18 = vunpack.c.h.bf16 %v88_v9 }
   0x5   :  { %v53_v19 = vunpack.c.l.bf16 %v89_v10  ;;  %v54_v20 = vunpack.c.h.bf16 %v89_v10 }
   0x6   :  { %68 = vperm.xlu1 %96, %v30_v1  }
   0x7   :  { %58 = vperm.xlu0 %95, %v20_v2  }
  0x7d   :  { %v34_v12 = vpop.permute.xlu1 %33 }
  0x7e   :  { %v24_v11 = vpop.permute.xlu0 %23 }
  0x7f   :  { %v26_v13 = vmul.f32 %v24_v11, %v16_v5  ;;  %v27_v14 = vmul.f32 %v24_v11, %v17_v6  ;;  %v28_v15 = vmul.f32 %v24_v11, %v18_v7  ;;  %v29_v16 = vmul.f32 %v24_v11, %v19_v8 }
  0x81   :  { %v36_v21 = vadd.f32 %v34_v12, %v26_v13  ;;  %v37_v22 = vadd.f32 %v34_v12, %v27_v14  ;;  %v38_v23 = vadd.f32 %v34_v12, %v28_v15  ;;  %v39_v24 = vadd.f32 %v34_v12, %v29_v16  ;;  %v69_v34 = vpop.permute.xlu1 %68 }
  0x82   :  { %v59_v25 = vpop.permute.xlu0 %58 }
  0x83   :  { %v40_v26 = vmax.f32 %v36_v21, 0.0  ;;  %v41_v27 = vmax.f32 %v37_v22, 0.0  ;;  %v42_v28 = vmax.f32 %v38_v23, 0.0  ;;  %v43_v29 = vmax.f32 %v39_v24, 0.0 }
  0x84   :  { %v61_v30 = vmul.f32 %v59_v25, %v51_v17  ;;  %v62_v31 = vmul.f32 %v59_v25, %v52_v18  ;;  %v63_v32 = vmul.f32 %v59_v25, %v53_v19  ;;  %v64_v33 = vmul.f32 %v59_v25, %v54_v20 }
  0x85   :  { %44 = vst [vmem:[%s163_s3] sm:$0xff] %v40_v26  ;;  %45 = vst [vmem:[%s163_s3 + $0x8] sm:$0xff] %v41_v27 }
  0x86   :  { %46 = vst [vmem:[%s163_s3 + $0x10] sm:$0xff] %v42_v28  ;;  %47 = vst [vmem:[%s163_s3 + $0x18] sm:$0xff] %v43_v29  ;;  %v71_v35 = vadd.f32 %v69_v34, %v61_v30  ;;  %v72_v36 = vadd.f32 %v69_v34, %v62_v31  ;;  %v73_v37 = vadd.f32 %v69_v34, %v63_v32 }
  0x87   :  { %v74_v38 = vadd.f32 %v69_v34, %v64_v33 }
  0x88   :  { %v75_v39 = vmax.f32 %v71_v35, 0.0  ;;  %v76_v40 = vmax.f32 %v72_v36, 0.0  ;;  %v77_v41 = vmax.f32 %v73_v37, 0.0 }
  0x89   :  { %v78_v42 = vmax.f32 %v74_v38, 0.0 }
  0x8a   :  { %90 = vst [vmem:[%s163_s3 + $0x20] sm:$0xff] %v75_v39  ;;  %91 = vst [vmem:[%s163_s3 + $0x28] sm:$0xff] %v76_v40 }
  0x8b   :  { %92 = vst [vmem:[%s163_s3 + $0x30] sm:$0xff] %v77_v41  ;;  %93 = vst [vmem:[%s163_s3 + $0x38] sm:$0xff] %v78_v42 }

// kernel: conv_block_3_forward.3
= control target key start
LH: loop header
LB: loop body
LE: loop exit
PB: predicated region body
PF: predicated region fallthrough
CT: control target
= control target key end

     0   :  { %s936_s14 = smov 97   ;;  %s937_s15 = smov 95   ;;  %vm29_vm0 = vcmask 1043456   ;;  %v944_v8 = vmov 0   ;;  %vm166_vm1 = vcmask 777216   ;;  %vm130_vm2 = vcmask 793600   ;;  %s1172_s0 = inlined_call_operand.vmem [shape: bf16[2,8,768], index: 0, kind: input, shape index: {}]   ;;  %s1173_s1 = inlined_call_operand.vmem [shape: bf16[8,72], index: 1, kind: input, shape index: {}]   ;;  %s1174_s2 = inlined_call_operand.vmem [shape: bf16[2,8,768], index: 2, kind: output, shape index: {0}]   ;;  %s1175_s3 = inlined_call_operand.vmem [shape: f32[1,8,2], index: 3, kind: output, shape index: {1}]  }
   0x1   :  { %v14_v0 = vld [vmem:[%s1172_s0] sm:$0xff]  ;;  %v15_v1 = vld [vmem:[%s1172_s0 + $0x8] sm:$0xff]  ;;  %s938_s18 = smov 96   ;;  %v16_v5 = vld [vmem:[%s1172_s0 + $0x10] sm:$0xff]  ;;  %s939_s21 = smov 127   ;;  %604 = vmatprep.mubr.bf16.mxu0 %v944_v8  ;;  %645 = vmatprep.mubr.bf16.mxu1 %v944_v8  ;;  %vm148_vm3 = vcmask 785408  }
   0x2   :  { %120 = vrot.lane.b32.xlu1 %v14_v0, %s936_s14  ;;  %156 = vrot.lane.b32.xlu0 %v14_v0, %s937_s15  ;;  %v94_v2 = vrot.slane %v15_v1, 4  ;;  %v93_v3 = vrot.slane %v14_v0, 4  ;;  %v95_v6 = vrot.slane %v16_v5, 4  ;;  %s940_s22 = smov 31   ;;  %s941_s23 = smov 1   ;;  %v865_v9 = vld [vmem:[%s1172_s0 + $0x20] sm:$0xff] }
   0x3   :  { %s942_s24 = smov 33   ;;  %s943_s25 = smov 32   ;;  %v864_v10 = vld [vmem:[%s1172_s0 + $0x18] sm:$0xff]  ;;  %v250_v12 = vrot.slane %v865_v9, 4  ;;  %v866_v14 = vld [vmem:[%s1172_s0 + $0x28] sm:$0xff]  ;;  %vm112_vm4 = vcmask 1039360  }
   0x4   :  { %v976_v4 = vsel %vm29_vm0, %v93_v3, %v94_v2  ;;  %v986_v7 = vsel %vm29_vm0, %v94_v2, %v95_v6  ;;  %v249_v11 = vrot.slane %v864_v10, 4  ;;  %v251_v15 = vrot.slane %v866_v14, 4  ;;  %815 = vst [vmem:[%s1174_s2] sm:$0xf] %v944_v8  ;;  %834 = vst [vmem:[%s1174_s2 + $0x14] sm:$0xf] %v944_v8 }
   0x5   :  { %vm67_vm5 = vcmask 252928   ;;  %vm85_vm6 = vcmask 7168   ;;  %vm31_vm7 = vcmask 269312   ;;  %vm49_vm8 = vcmask 261120   ;;  %917 = vst [vmem:[%s1174_s2 + $0x18] sm:$0xf] %v944_v8 }
   0x6   :  { %122 = vrot.lane.b32.xlu1 %v15_v1, %s936_s14  ;;  %158 = vrot.lane.b32.xlu0 %v15_v1, %s937_s15  ;;  %v1017_v13 = vsel %vm29_vm0, %v249_v11, %v250_v12  ;;  %v1027_v16 = vsel %vm29_vm0, %v250_v12, %v251_v15  ;;  %vm543_vm9 = vcmask 588800   ;;  %922 = vst [vmem:[%s1174_s2 + $0x2c] sm:$0xf] %v944_v8 }
   0xa   :  { %140 = vrot.lane.b32.xlu1 %v15_v1, %s938_s18  ;;  %138 = vrot.lane.b32.xlu0 %v14_v0, %s938_s18 }
   0xe   :  { %102 = vrot.lane.b32.xlu1 %v14_v0, %s939_s21  ;;  %160 = vrot.lane.b32.xlu0 %v16_v5, %s937_s15 }
  0x12   :  { %124 = vrot.lane.b32.xlu1 %v16_v5, %s936_s14  ;;  %104 = vrot.lane.b32.xlu0 %v15_v1, %s939_s21 }
  0x16   :  { %57 = vrot.lane.b32.xlu1 %v14_v0, %s940_s22  ;;  %142 = vrot.lane.b32.xlu0 %v16_v5, %s938_s18 }
  0x1a   :  { %75 = vrot.lane.b32.xlu1 %v14_v0, %s941_s23  ;;  %59 = vrot.lane.b32.xlu0 %v15_v1, %s940_s22 }
  0x1e   :  { %106 = vrot.lane.b32.xlu1 %v16_v5, %s939_s21  ;;  %77 = vrot.lane.b32.xlu0 %v15_v1, %s941_s23 }
  0x22   :  { %22 = vrot.lane.b32.xlu1 %v15_v1, %s942_s24  ;;  %20 = vrot.lane.b32.xlu0 %v14_v0, %s942_s24 }
  0x26   :  { %41 = vrot.lane.b32.xlu1 %v15_v1, %s943_s25  ;;  %39 = vrot.lane.b32.xlu0 %v14_v0, %s943_s25 }
  0x2a   :  { %79 = vrot.lane.b32.xlu1 %v16_v5, %s941_s23  ;;  %61 = vrot.lane.b32.xlu0 %v16_v5, %s940_s22 }
  0x2e   :  { %43 = vrot.lane.b32.xlu1 %v16_v5, %s943_s25  ;;  %24 = vrot.lane.b32.xlu0 %v16_v5, %s942_s24 }
  0x32   :  { %311 = vrot.lane.b32.xlu1 %v865_v9, %s937_s15  ;;  %309 = vrot.lane.b32.xlu0 %v864_v10, %s937_s15 }
  0x36   :  { %277 = vrot.lane.b32.xlu1 %v865_v9, %s936_s14  ;;  %275 = vrot.lane.b32.xlu0 %v864_v10, %s936_s14 }
  0x3a   :  { %294 = vrot.lane.b32.xlu1 %v865_v9, %s938_s18  ;;  %292 = vrot.lane.b32.xlu0 %v864_v10, %s938_s18 }
  0x3e   :  { %258 = vrot.lane.b32.xlu1 %v864_v10, %s939_s21  ;;  %313 = vrot.lane.b32.xlu0 %v866_v14, %s937_s15 }
  0x42   :  { %279 = vrot.lane.b32.xlu1 %v866_v14, %s936_s14  ;;  %260 = vrot.lane.b32.xlu0 %v865_v9, %s939_s21 }
  0x46   :  { %215 = vrot.lane.b32.xlu1 %v864_v10, %s940_s22  ;;  %296 = vrot.lane.b32.xlu0 %v866_v14, %s938_s18 }
  0x4a   :  { %232 = vrot.lane.b32.xlu1 %v864_v10, %s941_s23  ;;  %217 = vrot.lane.b32.xlu0 %v865_v9, %s940_s22 }
  0x4e   :  { %262 = vrot.lane.b32.xlu1 %v866_v14, %s939_s21  ;;  %234 = vrot.lane.b32.xlu0 %v865_v9, %s941_s23 }
  0x52   :  { %183 = vrot.lane.b32.xlu1 %v865_v9, %s942_s24  ;;  %181 = vrot.lane.b32.xlu0 %v864_v10, %s942_s24 }
  0x56   :  { %200 = vrot.lane.b32.xlu1 %v865_v9, %s943_s25  ;;  %198 = vrot.lane.b32.xlu0 %v864_v10, %s943_s25 }
  0x5a   :  { %236 = vrot.lane.b32.xlu1 %v866_v14, %s941_s23  ;;  %219 = vrot.lane.b32.xlu0 %v866_v14, %s940_s22 }
  0x5e   :  { %202 = vrot.lane.b32.xlu1 %v866_v14, %s943_s25  ;;  %185 = vrot.lane.b32.xlu0 %v866_v14, %s942_s24 }
  0x74   :  { %v121_v17 = vpop.permute.xlu1 %120  ;;  %v157_v18 = vpop.permute.xlu0 %156 }
  0x75   :  { %v162_v21 = vrot.slane %v157_v18, 4  ;;  %v126_v24 = vrot.slane %v121_v17, 4 }
  0x78   :  { %v123_v19 = vpop.permute.xlu1 %122  ;;  %v159_v20 = vpop.permute.xlu0 %158 }
  0x79   :  { %v127_v22 = vrot.slane %v123_v19, 4  ;;  %v163_v23 = vrot.slane %v159_v20, 4 }
  0x7b   :  { %v165_v25 = vsel %vm29_vm0, %v162_v21, %v163_v23  ;;  %v129_v26 = vsel %vm29_vm0, %v126_v24, %v127_v22 }
  0x7c   :  { %v167_v27 = vsel %vm166_vm1, %v165_v25, %v159_v20  ;;  %v141_v28 = vpop.permute.xlu1 %140  ;;  %v139_v29 = vpop.permute.xlu0 %138  ;;  %v131_v36 = vsel %vm130_vm2, %v129_v26, %v123_v19 }
  0x7d   :  { %v145_v30 = vrot.slane %v141_v28, 4  ;;  %v144_v31 = vrot.slane %v139_v29, 4  ;;  %v900_v32 = vcombine.high %v167_v27, %v167_v27  ;;  %v899_v33 = vcombine.low %v167_v27, %v167_v27 }
  0x7f   :  { %v147_v34 = vsel %vm29_vm0, %v144_v31, %v145_v30  ;;  %907 = vmatprep.subr.msk.bf16.mxu0 %vm29_vm0, %v900_v32  ;;  %v549_v35 = vsel %vm29_vm0, %v899_v33, 0 }
  0x80   :  { %v103_v37 = vpop.permute.xlu1 %102  ;;  %579 = vmatpush1.bf16.msra.mxu0 %v549_v35  ;;  %v161_v38 = vpop.permute.xlu0 %160  ;;  %v149_v39 = vsel %vm148_vm3, %v147_v34, %v141_v28 }
  0x81   :  { %v164_v40 = vrot.slane %v161_v38, 4  ;;  %v892_v41 = vcombine.high %v131_v36, %v149_v39  ;;  %v891_v42 = vcombine.low %v131_v36, %v149_v39  ;;  %v108_v44 = vrot.slane %v103_v37, 4 }
  0x83   :  { %v168_v43 = vsel %vm29_vm0, %v163_v23, %v164_v40  ;;  %580 = vmatprep.subr.bf16.mxu0 %v892_v41 }
  0x84   :  { %v169_v45 = vsel %vm166_vm1, %v168_v43, %v161_v38  ;;  %v125_v46 = vpop.permute.xlu1 %124  ;;  %581 = vmatpush1.bf16.msra.mxu0 %v891_v42  ;;  %v105_v47 = vpop.permute.xlu0 %104 }
  0x85   :  { %v128_v48 = vrot.slane %v125_v46, 4  ;;  %v109_v49 = vrot.slane %v105_v47, 4  ;;  %v902_v50 = vcombine.high %v169_v45, %v169_v45  ;;  %v901_v51 = vcombine.low %v169_v45, %v169_v45 }
  0x87   :  { %v111_v52 = vsel %vm29_vm0, %v108_v44, %v109_v49  ;;  %909 = vmatprep.subr.msk.bf16.mxu1 %vm29_vm0, %v902_v50  ;;  %v555_v53 = vsel %vm29_vm0, %v901_v51, 0  ;;  %v132_v57 = vsel %vm29_vm0, %v127_v22, %v128_v48  ;;  %v1084_v48 = vld [vmem:[%s1173_s1] sm:$0xf] }
  0x88   :  { %v113_v54 = vsel %vm112_vm4, %v111_v52, %v105_v47  ;;  %v58_v55 = vpop.permute.xlu1 %57  ;;  %620 = vmatpush1.bf16.msra.mxu1 %v555_v53  ;;  %v143_v56 = vpop.permute.xlu0 %142  ;;  %v133_v62 = vsel %vm130_vm2, %v132_v57, %v125_v46 }
  0x89   :  { %v883_v58 = vcombine.low %v976_v4, %v113_v54  ;;  %v884_v59 = vcombine.high %v976_v4, %v113_v54  ;;  %v146_v60 = vrot.slane %v143_v56, 4  ;;  %v63_v6 = vrot.slane %v58_v55, 4 }
  0x8b   :  { %v150_v61 = vsel %vm29_vm0, %v145_v30, %v146_v60  ;;  %582 = vmatprep.subr.bf16.mxu0 %v884_v59 }
  0x8c   :  { %v151_v63 = vsel %vm148_vm3, %v150_v61, %v143_v56  ;;  %v76_v0 = vpop.permute.xlu1 %75  ;;  %v60_v1 = vpop.permute.xlu0 %59  ;;  %583 = vmatpush1.bf16.msra.mxu0 %v883_v58 }
  0x8d   :  { %v893_v2 = vcombine.low %v133_v62, %v151_v63  ;;  %v894_v3 = vcombine.high %v133_v62, %v151_v63  ;;  %v64_v5 = vrot.slane %v60_v1, 4  ;;  %v81_v4 = vrot.slane %v76_v0, 4 }
  0x8f   :  { %621 = vmatprep.subr.bf16.mxu1 %v894_v3  ;;  %v66_v11 = vsel %vm29_vm0, %v63_v6, %v64_v5 }
  0x90   :  { %v107_v9 = vpop.permute.xlu1 %106  ;;  %622 = vmatpush1.bf16.msra.mxu1 %v893_v2  ;;  %v78_v10 = vpop.permute.xlu0 %77  ;;  %v68_v21 = vsel %vm67_vm5, %v58_v55, %v66_v11 }
  0x91   :  { %v110_v12 = vrot.slane %v107_v9, 4  ;;  %v82_v14 = vrot.slane %v78_v10, 4 }
  0x93   :  { %v114_v15 = vsel %vm29_vm0, %v109_v49, %v110_v12  ;;  %v84_v17 = vsel %vm29_vm0, %v81_v4, %v82_v14 }
  0x94   :  { %v115_v18 = vsel %vm112_vm4, %v114_v15, %v107_v9  ;;  %v23_v19 = vpop.permute.xlu1 %22  ;;  %v21_v20 = vpop.permute.xlu0 %20  ;;  %v86_v22 = vsel %vm85_vm6, %v76_v0, %v84_v17 }
  0x95   :  { %v885_v23 = vcombine.low %v986_v7, %v115_v18  ;;  %v886_v24 = vcombine.high %v986_v7, %v115_v18  ;;  %v27_v25 = vrot.slane %v23_v19, 4  ;;  %v26_v26 = vrot.slane %v21_v20, 4 }
  0x96   :  { %v876_v27 = vcombine.high %v68_v21, %v86_v22  ;;  %v875_v28 = vcombine.low %v68_v21, %v86_v22 }
  0x97   :  { %623 = vmatprep.subr.bf16.mxu1 %v886_v24  ;;  %v30_v31 = vsel %vm29_vm0, %v26_v26, %v27_v25 }
  0x98   :  { %584 = vmatprep.subr.bf16.mxu0 %v876_v27  ;;  %v42_v29 = vpop.permute.xlu1 %41  ;;  %624 = vmatpush1.bf16.msra.mxu1 %v885_v23  ;;  %v40_v30 = vpop.permute.xlu0 %39  ;;  %v32_v7 = vsel %vm31_vm7, %v21_v20, %v30_v31 }
  0x99   :  { %v46_v32 = vrot.slane %v42_v29, 4  ;;  %v45_v33 = vrot.slane %v40_v30, 4  ;;  %585 = vmatpush1.bf16.msra.mxu0 %v875_v28 }
  0x9b   :  { %v48_v34 = vsel %vm29_vm0, %v45_v33, %v46_v32 }
  0x9c   :  { %v50_v35 = vsel %vm49_vm8, %v40_v30, %v48_v34  ;;  %v80_v36 = vpop.permute.xlu1 %79  ;;  %v62_v37 = vpop.permute.xlu0 %61 }
  0x9d   :  { %v867_v38 = vcombine.low %v32_v7, %v50_v35  ;;  %v868_v39 = vcombine.high %v32_v7, %v50_v35  ;;  %v83_v40 = vrot.slane %v80_v36, 4  ;;  %v65_v41 = vrot.slane %v62_v37, 4 }
  0x9f   :  { %v87_v42 = vsel %vm29_vm0, %v82_v14, %v83_v40  ;;  %v69_v43 = vsel %vm29_vm0, %v64_v5, %v65_v41  ;;  %586 = vmatprep.subr.bf16.mxu0 %v868_v39 }
  0xa0   :  { %v44_v44 = vpop.permute.xlu1 %43  ;;  %v25_v45 = vpop.permute.xlu0 %24  ;;  %587 = vmatpush1.bf16.msra.mxu0 %v867_v38  ;;  %v70_v46 = vsel %vm67_vm5, %v60_v1, %v69_v43  ;;  %v88_v47 = vsel %vm85_vm6, %v78_v10, %v87_v42 }
  0xa1   :  { %v47_v49 = vrot.slane %v44_v44, 4  ;;  %v28_v50 = vrot.slane %v25_v45, 4  ;;  %v878_v51 = vcombine.high %v70_v46, %v88_v47  ;;  %v877_v52 = vcombine.low %v70_v46, %v88_v47 }
  0xa3   :  { %v51_v53 = vsel %vm29_vm0, %v46_v32, %v47_v49  ;;  %v33_v54 = vsel %vm29_vm0, %v27_v25, %v28_v50  ;;  %625 = vmatprep.subr.bf16.mxu1 %v878_v51  ;;  %908 = vmatmul.mubr.msk.bf16.vlgmr.msra.gmra.mxu0 %vm543_vm9, %v1084_v48 }
  0xa4   :  { %v312_v55 = vpop.permute.xlu1 %311  ;;  %626 = vmatpush1.bf16.msra.mxu1 %v877_v52  ;;  %v310_v56 = vpop.permute.xlu0 %309  ;;  %v34_v57 = vsel %vm31_vm7, %v23_v19, %v33_v54  ;;  %v52_v58 = vsel %vm49_vm8, %v42_v29, %v51_v53  ;;  %686 = vmatprep.mubr.bf16.mxu0 %v944_v8 }
  0xa5   :  { %v316_v59 = vrot.slane %v312_v55, 4  ;;  %v315_v60 = vrot.slane %v310_v56, 4  ;;  %v870_v61 = vcombine.high %v34_v57, %v52_v58  ;;  %v869_v62 = vcombine.low %v34_v57, %v52_v58 }
  0xa7   :  { %v318_v63 = vsel %vm29_vm0, %v315_v60, %v316_v59  ;;  %627 = vmatprep.subr.bf16.mxu1 %v870_v61 }
  0xa8   :  { %v319_v0 = vsel %vm166_vm1, %v318_v63, %v312_v55  ;;  %v278_v1 = vpop.permute.xlu1 %277  ;;  %628 = vmatpush1.bf16.msra.mxu1 %v869_v62  ;;  %v276_v2 = vpop.permute.xlu0 %275 }
  0xa9   :  { %v282_v3 = vrot.slane %v278_v1, 4  ;;  %v281_v5 = vrot.slane %v276_v2, 4  ;;  %v904_v6 = vcombine.high %v319_v0, %v319_v0  ;;  %v903_v9 = vcombine.low %v319_v0, %v319_v0 }
  0xab   :  { %911 = vmatprep.subr.msk.bf16.mxu0 %vm29_vm0, %v904_v6  ;;  %v561_v10 = vsel %vm29_vm0, %v903_v9, 0  ;;  %910 = vmatmul.mubr.msk.bf16.vlgmr.msra.gmra.mxu1 %vm543_vm9, %v1084_v48  ;;  %v284_v12 = vsel %vm29_vm0, %v281_v5, %v282_v3 }
  0xac   :  { %v295_v4 = vpop.permute.xlu1 %294  ;;  %v293_v11 = vpop.permute.xlu0 %292  ;;  %661 = vmatpush1.bf16.msra.mxu0 %v561_v10  ;;  %727 = vmatprep.mubr.bf16.mxu1 %v944_v8  ;;  %v285_v20 = vsel %vm130_vm2, %v284_v12, %v278_v1 }
  0xad   :  { %v299_v14 = vrot.slane %v295_v4, 4  ;;  %v298_v15 = vrot.slane %v293_v11, 4 }
  0xaf   :  { %v301_v17 = vsel %vm29_vm0, %v298_v15, %v299_v14 }
  0xb0   :  { %v259_v18 = vpop.permute.xlu1 %258  ;;  %v314_v19 = vpop.permute.xlu0 %313  ;;  %v302_v21 = vsel %vm148_vm3, %v301_v17, %v295_v4 }
  0xb1   :  { %v317_v22 = vrot.slane %v314_v19, 4  ;;  %v895_v23 = vcombine.low %v285_v20, %v302_v21  ;;  %v896_v24 = vcombine.high %v285_v20, %v302_v21  ;;  %v264_v26 = vrot.slane %v259_v18, 4 }
  0xb3   :  { %v320_v25 = vsel %vm29_vm0, %v316_v59, %v317_v22  ;;  %662 = vmatprep.subr.bf16.mxu0 %v896_v24 }
  0xb4   :  { %v321_v27 = vsel %vm166_vm1, %v320_v25, %v314_v19  ;;  %v280_v28 = vpop.permute.xlu1 %279  ;;  %v261_v29 = vpop.permute.xlu0 %260  ;;  %663 = vmatpush1.bf16.msra.mxu0 %v895_v23 }
  0xb5   :  { %v905_v30 = vcombine.low %v321_v27, %v321_v27  ;;  %v906_v31 = vcombine.high %v321_v27, %v321_v27  ;;  %v283_v32 = vrot.slane %v280_v28, 4  ;;  %v265_v33 = vrot.slane %v261_v29, 4 }
  0xb7   :  { %v267_v34 = vsel %vm29_vm0, %v264_v26, %v265_v33  ;;  %913 = vmatprep.subr.msk.bf16.mxu1 %vm29_vm0, %v906_v31  ;;  %v567_v7 = vsel %vm29_vm0, %v905_v30, 0  ;;  %v286_v38 = vsel %vm29_vm0, %v282_v3, %v283_v32 }
  0xb8   :  { %v268_v35 = vsel %vm112_vm4, %v267_v34, %v261_v29  ;;  %v216_v36 = vpop.permute.xlu1 %215  ;;  %702 = vmatpush1.bf16.msra.mxu1 %v567_v7  ;;  %v297_v37 = vpop.permute.xlu0 %296  ;;  %v287_v43 = vsel %vm130_vm2, %v286_v38, %v280_v28  ;;  %vm813_vm2 = vcmask 15360  }
  0xb9   :  { %v887_v39 = vcombine.low %v1017_v13, %v268_v35  ;;  %v888_v40 = vcombine.high %v1017_v13, %v268_v35  ;;  %v300_v41 = vrot.slane %v297_v37, 4  ;;  %v221_v51 = vrot.slane %v216_v36, 4 }
  0xbb   :  { %v303_v42 = vsel %vm29_vm0, %v299_v14, %v300_v41  ;;  %664 = vmatprep.subr.bf16.mxu0 %v888_v40 }
  0xbc   :  { %v304_v44 = vsel %vm148_vm3, %v303_v42, %v297_v37  ;;  %v233_v45 = vpop.permute.xlu1 %232  ;;  %v218_v46 = vpop.permute.xlu0 %217  ;;  %665 = vmatpush1.bf16.msra.mxu0 %v887_v39 }
  0xbd   :  { %v897_v47 = vcombine.low %v287_v43, %v304_v44  ;;  %v898_v49 = vcombine.high %v287_v43, %v304_v44  ;;  %v222_v50 = vrot.slane %v218_v46, 4  ;;  %v238_v13 = vrot.slane %v233_v45, 4 }
  0xbf   :  { %703 = vmatprep.subr.bf16.mxu1 %v898_v49  ;;  %v224_v54 = vsel %vm29_vm0, %v221_v51, %v222_v50 }
  0xc0   :  { %v263_v52 = vpop.permute.xlu1 %262  ;;  %704 = vmatpush1.bf16.msra.mxu1 %v897_v47  ;;  %v235_v53 = vpop.permute.xlu0 %234  ;;  %v225_v62 = vsel %vm67_vm5, %v216_v36, %v224_v54 }
  0xc1   :  { %v266_v55 = vrot.slane %v263_v52, 4  ;;  %v239_v56 = vrot.slane %v235_v53, 4 }
  0xc3   :  { %v269_v57 = vsel %vm29_vm0, %v265_v33, %v266_v55  ;;  %v241_v58 = vsel %vm29_vm0, %v238_v13, %v239_v56 }
  0xc4   :  { %v270_v59 = vsel %vm112_vm4, %v269_v57, %v263_v52  ;;  %v184_v60 = vpop.permute.xlu1 %183  ;;  %v182_v61 = vpop.permute.xlu0 %181  ;;  %v242_v63 = vsel %vm85_vm6, %v233_v45, %v241_v58 }
  0xc5   :  { %v889_v0 = vcombine.low %v1027_v16, %v270_v59  ;;  %v890_v1 = vcombine.high %v1027_v16, %v270_v59  ;;  %v188_v2 = vrot.slane %v184_v60, 4  ;;  %v187_v3 = vrot.slane %v182_v61, 4 }
  0xc6   :  { %v879_v5 = vcombine.low %v225_v62, %v242_v63  ;;  %v880_v6 = vcombine.high %v225_v62, %v242_v63 }
  0xc7   :  { %705 = vmatprep.subr.bf16.mxu1 %v890_v1  ;;  %v190_v4 = vsel %vm29_vm0, %v187_v3, %v188_v2 }
  0xc8   :  { %666 = vmatprep.subr.bf16.mxu0 %v880_v6  ;;  %v201_v9 = vpop.permute.xlu1 %200  ;;  %706 = vmatpush1.bf16.msra.mxu1 %v889_v0  ;;  %v199_v10 = vpop.permute.xlu0 %198  ;;  %v191_v15 = vsel %vm31_vm7, %v182_v61, %v190_v4 }
  0xc9   :  { %v205_v11 = vrot.slane %v201_v9, 4  ;;  %v204_v12 = vrot.slane %v199_v10, 4  ;;  %667 = vmatpush1.bf16.msra.mxu0 %v879_v5 }
  0xcb   :  { %v207_v14 = vsel %vm29_vm0, %v204_v12, %v205_v11 }
  0xcc   :  { %v208_v16 = vsel %vm49_vm8, %v199_v10, %v207_v14  ;;  %v237_v17 = vpop.permute.xlu1 %236  ;;  %v220_v18 = vpop.permute.xlu0 %219 }
  0xcd   :  { %v871_v19 = vcombine.low %v191_v15, %v208_v16  ;;  %v872_v20 = vcombine.high %v191_v15, %v208_v16  ;;  %v240_v21 = vrot.slane %v237_v17, 4  ;;  %v223_v22 = vrot.slane %v220_v18, 4 }
  0xcf   :  { %v243_v23 = vsel %vm29_vm0, %v239_v56, %v240_v21  ;;  %v226_v24 = vsel %vm29_vm0, %v222_v50, %v223_v22  ;;  %668 = vmatprep.subr.bf16.mxu0 %v872_v20 }
  0xd0   :  { %v203_v25 = vpop.permute.xlu1 %202  ;;  %v186_v26 = vpop.permute.xlu0 %185  ;;  %669 = vmatpush1.bf16.msra.mxu0 %v871_v19  ;;  %v227_v27 = vsel %vm67_vm5, %v218_v46, %v226_v24  ;;  %v244_v28 = vsel %vm85_vm6, %v235_v53, %v243_v23 }
  0xd1   :  { %v206_v29 = vrot.slane %v203_v25, 4  ;;  %v189_v30 = vrot.slane %v186_v26, 4  ;;  %v881_v31 = vcombine.low %v227_v27, %v244_v28  ;;  %v882_v32 = vcombine.high %v227_v27, %v244_v28 }
  0xd3   :  { %v209_v33 = vsel %vm29_vm0, %v205_v11, %v206_v29  ;;  %v192_v34 = vsel %vm29_vm0, %v188_v2, %v189_v30  ;;  %912 = vmatmul.mubr.msk.bf16.vlgmr.msra.gmra.mxu0 %vm543_vm9, %v1084_v48  ;;  %707 = vmatprep.subr.bf16.mxu1 %v882_v32 }
  0xd4   :  { %708 = vmatpush1.bf16.msra.mxu1 %v881_v31  ;;  %v193_v7 = vsel %vm31_vm7, %v184_v60, %v192_v34  ;;  %v210_v35 = vsel %vm49_vm8, %v201_v9, %v209_v33 }
  0xd5   :  { %v873_v36 = vcombine.low %v193_v7, %v210_v35  ;;  %v874_v37 = vcombine.high %v193_v7, %v210_v35 }
  0xd7   :  { %709 = vmatprep.subr.bf16.mxu1 %v874_v37 }
  0xd8   :  { %710 = vmatpush1.bf16.msra.mxu1 %v873_v36 }
  0xdb   :  { %914 = vmatmul.mubr.msk.bf16.vlgmr.msra.gmra.mxu1 %vm543_vm9, %v1084_v48  ;;  %v736_v48 = vlaneseq }
  0xdd   :  { %v737_v38 = vand.u32 127, %v736_v48 }
  0xdf   :  { %v738_v39 = vadd.s32 128, %v737_v38  ;;  %v745_v40 = vand.u32 31, %v737_v38  ;;  %v739_v43 = vadd.s32 256, %v737_v38  ;;  %v740_v44 = vadd.s32 384, %v737_v38 }
  0xe0   :  { %v741_v59 = vadd.s32 512, %v737_v38  ;;  %v742_v62 = vadd.s32 640, %v737_v38  ;;  %v743_v6 = vadd.s32 768, %v737_v38  ;;  %v744_v11 = vadd.s32 896, %v737_v38 }
  0xe1   :  { %v746_v41 = vand.u32 31, %v738_v39  ;;  %vm753_vm10 = vcmp.lt.s32.totalorder %v745_v40, 16  ;;  %v747_v51 = vand.u32 31, %v739_v43  ;;  %v748_v52 = vand.u32 31, %v740_v44 }
  0xe2   :  { %v749_v0 = vand.u32 31, %v741_v59  ;;  %v750_v3 = vand.u32 31, %v742_v62  ;;  %v751_v17 = vand.u32 31, %v743_v6  ;;  %v752_v23 = vand.u32 31, %v744_v11 }
  0xe3   :  { %vm754_vm11 = vcmp.lt.s32.totalorder %v746_v41, 16  ;;  %vm755_vm12 = vcmp.lt.s32.totalorder %v747_v51, 16  ;;  %vm756_vm13 = vcmp.lt.s32.totalorder %v748_v52, 16 }
  0xe4   :  { %vm757_vm14 = vcmp.lt.s32.totalorder %v749_v0, 16  ;;  %vm758_vm15 = vcmp.lt.s32.totalorder %v750_v3, 16  ;;  %vm759_vm0 = vcmp.lt.s32.totalorder %v751_v17, 16  ;;  %vm760_vm1 = vcmp.lt.s32.totalorder %v752_v23, 16 }
 0x163   :  { %v606_v42 = vpop.f32.mrf.mxu0 }
 0x164   :  { %v777_v45 = vsel %vm753_vm10, %v606_v42, 0.0 }
 0x165   :  { %v608_v46 = vpop.f32.mrf.mxu0  ;;  %v794_v60 = vmul.f32 %v777_v45, %v777_v45 }
 0x166   :  { %v778_v47 = vsel %vm754_vm11, %v608_v46, 0.0 }
 0x167   :  { %v923_v49 = vpack.c.bf16 %v778_v47, %v777_v45  ;;  %v610_v50 = vpop.f32.mrf.mxu0  ;;  %v795_v61 = vmul.f32 %v778_v47, %v778_v47  ;;  %v785_v63 = vadd.f32 %v778_v47, %v777_v45 }
 0x169   :  { %832 = vst [vmem:[%s1174_s2 + $0x4] sm:$0xff] %v923_v49  ;;  %v611_v8 = vpop.f32.mrf.mxu0  ;;  %v802_v1 = vadd.f32 %v795_v61, %v794_v60 }
 0x16b   :  { %v647_v53 = vpop.f32.mrf.mxu1 }
 0x16c   :  { %v779_v54 = vsel %vm755_vm12, %v647_v53, 0.0 }
 0x16d   :  { %v649_v13 = vpop.f32.mrf.mxu1  ;;  %v796_v2 = vmul.f32 %v779_v54, %v779_v54  ;;  %v786_v5 = vadd.f32 %v785_v63, %v779_v54 }
 0x16e   :  { %v780_v55 = vsel %vm756_vm13, %v649_v13, 0.0 }
 0x16f   :  { %v924_v56 = vpack.c.bf16 %v780_v55, %v779_v54  ;;  %v651_v57 = vpop.f32.mrf.mxu1  ;;  %v803_v9 = vadd.f32 %v802_v1, %v796_v2  ;;  %v797_v10 = vmul.f32 %v780_v55, %v780_v55  ;;  %v787_v14 = vadd.f32 %v786_v5, %v780_v55 }
 0x171   :  { %833 = vst [vmem:[%s1174_s2 + $0xc] sm:$0xff] %v924_v56  ;;  %v652_v58 = vpop.f32.mrf.mxu1  ;;  %v804_v19 = vadd.f32 %v803_v9, %v797_v10 }
 0x193   :  { %v688_v4 = vpop.f32.mrf.mxu0 }
 0x194   :  { %v781_v12 = vsel %vm757_vm14, %v688_v4, 0.0 }
 0x195   :  { %v798_v15 = vmul.f32 %v781_v12, %v781_v12  ;;  %v690_v16 = vpop.f32.mrf.mxu0  ;;  %v788_v20 = vadd.f32 %v787_v14, %v781_v12 }
 0x196   :  { %v782_v18 = vsel %vm758_vm15, %v690_v16, 0.0 }
 0x197   :  { %v925_v21 = vpack.c.bf16 %v782_v18, %v781_v12  ;;  %v692_v22 = vpop.f32.mrf.mxu0  ;;  %v805_v24 = vadd.f32 %v804_v19, %v798_v15  ;;  %v799_v25 = vmul.f32 %v782_v18, %v782_v18  ;;  %v789_v27 = vadd.f32 %v788_v20, %v782_v18 }
 0x199   :  { %920 = vst [vmem:[%s1174_s2 + $0x1c] sm:$0xff] %v925_v21  ;;  %v693_v26 = vpop.f32.mrf.mxu0  ;;  %v806_v30 = vadd.f32 %v805_v24, %v799_v25 }
 0x19b   :  { %v729_v28 = vpop.f32.mrf.mxu1 }
 0x19c   :  { %v783_v29 = vsel %vm759_vm0, %v729_v28, 0.0 }
 0x19d   :  { %v790_v31 = vadd.f32 %v789_v27, %v783_v29  ;;  %v800_v32 = vmul.f32 %v783_v29, %v783_v29  ;;  %v731_v33 = vpop.f32.mrf.mxu1 }
 0x19e   :  { %v784_v34 = vsel %vm760_vm1, %v731_v33, 0.0 }
 0x19f   :  { %v801_v7 = vmul.f32 %v784_v34, %v784_v34  ;;  %v926_v35 = vpack.c.bf16 %v784_v34, %v783_v29  ;;  %v733_v36 = vpop.f32.mrf.mxu1  ;;  %v791_v37 = vadd.f32 %v790_v31, %v784_v34  ;;  %v807_v48 = vadd.f32 %v806_v30, %v800_v32 }
 0x1a1   :  { %921 = vst [vmem:[%s1174_s2 + $0x24] sm:$0xff] %v926_v35  ;;  %v734_v38 = vpop.f32.mrf.mxu1  ;;  %792 = vadd.xlane.f32.xlu0 %v791_v37  ;;  %v808_v39 = vadd.f32 %v807_v48, %v801_v7 }
 0x1a3   :  { %809 = vadd.xlane.f32.xlu1 %v808_v39 }
 0x22a   :  { %v793_v40 = vpop.xlane.xlu0 %792 }
 0x22c   :  { %v810_v41 = vpop.xlane.xlu1 %809 }
 0x22d   :  { %v812_v42 = vsel %vm85_vm6, %v793_v40, %v810_v41 }
 0x22e   :  { %814 = vst.msk [vmem:[%s1175_s3] sm:$0xff] %vm813_vm2, %v812_v42 }

// kernel: conv_block_3_forward.4
= control target key start
LH: loop header
LB: loop body
LE: loop exit
PB: predicated region body
PF: predicated region fallthrough
CT: control target
= control target key end

     0   :  { %v1097_v0 = vmov 0   ;;  %v20_v5 = vlaneseq  ;;  %v1098_v11 = vmov 839922192   ;;  %s1100_s30 = smov 95   ;;  %s1101_s6 = smov 97   ;;  %s1507_s2 = inlined_call_operand.vmem [shape: bf16[8,1], index: 2, kind: input, shape index: {}]   ;;  %s1508_s3 = inlined_call_operand.vmem [shape: bf16[8,1], index: 3, kind: input, shape index: {}]   ;;  %s1509_s0 = inlined_call_operand.vmem [shape: bf16[2,8,768], index: 0, kind: input, shape index: {}]   ;;  %s1510_s1 = inlined_call_operand.vmem [shape: bf16[8,72], index: 1, kind: input, shape index: {}]   ;;  %s1511_s4 = inlined_call_operand.vmem [shape: bf16[2,8,768], index: 4, kind: output, shape index: {0}]   ;;  %s1512_s5 = inlined_call_operand.vmem [shape: f32[1,8,2], index: 5, kind: output, shape index: {1}]  }
   0x1   :  { %1095 = vset.pattern.permute.xlu0 %v1097_v0  ;;  %v84_v1 = vld [vmem:[%s1507_s2] sm:$0xf]  ;;  %1096 = vset.pattern.permute.xlu1 %v1097_v0  ;;  %v91_v12 = vunpack.c.l.s4 %v1098_v11  ;;  %v82_v38 = vld [vmem:[%s1509_s0 + $0x8] sm:$0xff]  ;;  %v83_v39 = vld [vmem:[%s1509_s0 + $0x10] sm:$0xff]  ;;  %s1102_s7 = smov 96   ;;  %s1103_s8 = smov 127  }
   0x2   :  { %v298_v2 = vld [vmem:[%s1507_s2] sm:$0xf]  ;;  %87 = vperm.xlu0 %1095, %v84_v1   ;;  %762 = vmatprep.mubr.bf16.mxu0 %v1097_v0  ;;  %v1154_v6 = vand.u32 127, %v20_v5  ;;  %v94_v19 = vshrl.u32 %v20_v5, 7  ;;  %s1104_s9 = smov 31   ;;  %s1105_s10 = smov 1  }
   0x3   :  { %301 = vperm.xlu1 %1096, %v298_v2   ;;  %v100_v3 = vld [vmem:[%s1508_s3] sm:$0xf]  ;;  %803 = vmatprep.mubr.bf16.mxu1 %v1097_v0  ;;  %v92_v18 = vunpack.c.0.s8 %v91_v12  ;;  %v1021_v2 = vld [vmem:[%s1509_s0 + $0x18] sm:$0xff]  ;;  %s1106_s15 = smov 33   ;;  %s1107_s16 = smov 32   ;;  %966 = vst [vmem:[%s1511_s4] sm:$0xf] %v1097_v0 }
   0x4   :  { %v314_v4 = vld [vmem:[%s1508_s3] sm:$0xf]  ;;  %v1157_v7 = vadd.s32 512, %v1154_v6  ;;  %v1160_v8 = vadd.s32 128, %v1154_v6  ;;  %v1015_v9 = vadd.s32 4294967201, %v1154_v6  ;;  %v1164_v10 = vadd.s32 256, %v1154_v6 }
   0x5   :  { %v1167_v13 = vadd.s32 384, %v1154_v6  ;;  %v1173_v24 = vsub.s32 %v92_v18, %v94_v19  ;;  %v81_v34 = vld [vmem:[%s1509_s0] sm:$0xff]  ;;  %985 = vst [vmem:[%s1511_s4 + $0x14] sm:$0xf] %v1097_v0  ;;  %1074 = vst [vmem:[%s1511_s4 + $0x18] sm:$0xf] %v1097_v0 }
   0x6   :  { %103 = vperm.xlu0 %1095, %v100_v3   ;;  %v1019_v14 = vadd.s32 4294967201, %v1157_v7  ;;  %v1016_v15 = vadd.s32 4294967201, %v1160_v8  ;;  %v33_v16 = vand.u32 31, %v1015_v9  ;;  %v1017_v17 = vadd.s32 4294967201, %v1164_v10  ;;  %v1022_v3 = vld [vmem:[%s1509_s0 + $0x20] sm:$0xff] }
   0x7   :  { %317 = vperm.xlu1 %1096, %v314_v4   ;;  %v1018_v20 = vadd.s32 4294967201, %v1167_v13  ;;  %vm39_vm0 = vcmp.ge.s32.totalorder %v1015_v9, 32  ;;  %1079 = vst [vmem:[%s1511_s4 + $0x2c] sm:$0xf] %v1097_v0 }
   0x8   :  { %v37_v21 = vand.u32 31, %v1019_v14  ;;  %v34_v22 = vand.u32 31, %v1016_v15  ;;  %vm57_vm1 = vcmp.ge.s32.totalorder %v33_v16, 1  ;;  %v35_v23 = vand.u32 31, %v1017_v17  ;;  %v1023_v17 = vld [vmem:[%s1509_s0 + $0x28] sm:$0xff] }
   0x9   :  { %v36_v25 = vand.u32 31, %v1018_v20  ;;  %vm49_vm2 = vcmp.lt.s32.totalorder %v1019_v14, 544  ;;  %vm1175_vm4 = vmand %vm39_vm0, %vm57_vm1  ;;  %vm1179_vm5 = vcmp.le.s32.totalorder %v33_v16, 16 }
   0xa   :  { %vm61_vm3 = vcmp.ge.s32.totalorder %v37_v21, 1  ;;  %vm1183_vm6 = vcmp.ge.s32.totalorder %v34_v22, 1  ;;  %vm1187_vm7 = vcmp.le.s32.totalorder %v34_v22, 16  ;;  %vm1191_vm8 = vcmp.ge.s32.totalorder %v35_v23, 1  ;;  %vm75_vm13 = vmand %vm1175_vm4, %vm1179_vm5 }
   0xb   :  { %vm1195_vm9 = vmand %vm49_vm2, %vm61_vm3  ;;  %vm1199_vm10 = vcmp.le.s32.totalorder %v35_v23, 16  ;;  %vm1207_vm11 = vcmp.ge.s32.totalorder %v36_v25, 1  ;;  %vm1211_vm12 = vcmp.le.s32.totalorder %v36_v25, 16  ;;  %vm1225_vm14 = vcmp.le.s32.totalorder %v37_v21, 16 }
   0xc   :  { %vm76_vm15 = vmand %vm1183_vm6, %vm1187_vm7  ;;  %vm1099_vm5 = vmmov 0   ;;  %vm149_vm7 = vcmask 1043456  }
   0xd   :  { %vm77_vm0 = vmand %vm1191_vm8, %vm1199_vm10  ;;  %vm286_vm8 = vcmask 777216   ;;  %vm268_vm10 = vcmask 785408  }
   0xe   :  { %vm78_vm1 = vmand %vm1207_vm11, %vm1211_vm12  ;;  %vm232_vm11 = vcmask 1039360   ;;  %vm187_vm12 = vcmask 252928  }
   0xf   :  { %vm79_vm2 = vmand %vm1195_vm9, %vm1225_vm14  ;;  %vm250_vm9 = vcmask 793600   ;;  %vm151_vm14 = vcmask 269312  }
  0x10   :  { %vm1246_vm3 = vmpackc.low %vm76_vm15, %vm75_vm13  ;;  %vm205_vm13 = vcmask 7168   ;;  %vm169_vm15 = vcmask 261120  }
  0x11   :  { %vm1250_vm4 = vmpackc.low %vm78_vm1, %vm77_vm0  ;;  %vm701_vm0 = vcmask 588800  }
  0x12   :  { %vm1254_vm6 = vmpackc.low %vm1099_vm5, %vm79_vm2 }
  0x7d   :  { %v88_v30 = vpop.permute.xlu0 %87 }
  0x7e   :  { %v96_v35 = vrot.slane %v88_v30, %v1173_v24  ;;  %v302_v63 = vpop.permute.xlu1 %301 }
  0x7f   :  { %v310_v1 = vrot.slane %v302_v63, %v1173_v24 }
  0x80   :  { %v97_v42 = vmul.bf16 %v96_v35, %v81_v34  ;;  %v98_v43 = vmul.bf16 %v96_v35, %v82_v38  ;;  %v99_v44 = vmul.bf16 %v96_v35, %v83_v39 }
  0x81   :  { %v104_v41 = vpop.permute.xlu0 %103  ;;  %v311_v5 = vmul.bf16 %v1021_v2, %v310_v1  ;;  %v312_v9 = vmul.bf16 %v1022_v3, %v310_v1  ;;  %v313_v18 = vmul.bf16 %v1023_v17, %v310_v1 }
  0x82   :  { %v112_v45 = vrot.slane %v104_v41, %v1173_v24  ;;  %v318_v4 = vpop.permute.xlu1 %317 }
  0x83   :  { %v326_v11 = vrot.slane %v318_v4, %v1173_v24 }
  0x84   :  { %v113_v48 = vadd.bf16 %v112_v45, %v97_v42  ;;  %v114_v49 = vadd.bf16 %v112_v45, %v98_v43  ;;  %v115_v50 = vadd.bf16 %v112_v45, %v99_v44 }
  0x85   :  { %v327_v12 = vadd.bf16 %v326_v11, %v311_v5  ;;  %v328_v14 = vadd.bf16 %v326_v11, %v312_v9  ;;  %v329_v21 = vadd.bf16 %v326_v11, %v313_v18 }
  0x86   :  { %v116_v52 = vmax.bf16 %v1097_v0, %v113_v48  ;;  %v117_v53 = vmax.bf16 %v1097_v0, %v114_v49  ;;  %v118_v54 = vmax.bf16 %v1097_v0, %v115_v50 }
  0x87   :  { %v330_v15 = vmax.bf16 %v1097_v0, %v327_v12  ;;  %v331_v16 = vmax.bf16 %v1097_v0, %v328_v14  ;;  %v332_v22 = vmax.bf16 %v1097_v0, %v329_v21 }
  0x88   :  { %v134_v55 = vsel %vm1246_vm3, %v116_v52, 0  ;;  %v135_v56 = vsel %vm1250_vm4, %v117_v53, 0  ;;  %v136_v57 = vsel %vm1254_vm6, %v118_v54, 0 }
  0x89   :  { %278 = vrot.lane.b32.xlu1 %v135_v56, %s1100_s30  ;;  %276 = vrot.lane.b32.xlu0 %v134_v55, %s1100_s30  ;;  %v214_v58 = vrot.slane %v135_v56, 4  ;;  %v213_v59 = vrot.slane %v134_v55, 4  ;;  %v215_v60 = vrot.slane %v136_v57, 4  ;;  %v1312_v19 = vsel %vm1246_vm3, %v330_v15, 0 }
  0x8a   :  { %v1316_v20 = vsel %vm1250_vm4, %v331_v16, 0  ;;  %v1333_v23 = vsel %vm1254_vm6, %v332_v22, 0 }
  0x8b   :  { %v1270_v61 = vsel %vm149_vm7, %v213_v59, %v214_v58  ;;  %v1273_v62 = vsel %vm149_vm7, %v214_v58, %v215_v60 }
  0x8d   :  { %242 = vrot.lane.b32.xlu1 %v135_v56, %s1101_s6  ;;  %240 = vrot.lane.b32.xlu0 %v134_v55, %s1101_s6 }
  0x91   :  { %260 = vrot.lane.b32.xlu1 %v135_v56, %s1102_s7  ;;  %258 = vrot.lane.b32.xlu0 %v134_v55, %s1102_s7 }
  0x95   :  { %222 = vrot.lane.b32.xlu1 %v134_v55, %s1103_s8  ;;  %280 = vrot.lane.b32.xlu0 %v136_v57, %s1100_s30 }
  0x99   :  { %244 = vrot.lane.b32.xlu1 %v136_v57, %s1101_s6  ;;  %224 = vrot.lane.b32.xlu0 %v135_v56, %s1103_s8 }
  0x9d   :  { %177 = vrot.lane.b32.xlu1 %v134_v55, %s1104_s9  ;;  %262 = vrot.lane.b32.xlu0 %v136_v57, %s1102_s7 }
  0xa1   :  { %195 = vrot.lane.b32.xlu1 %v134_v55, %s1105_s10  ;;  %179 = vrot.lane.b32.xlu0 %v135_v56, %s1104_s9 }
  0xa5   :  { %226 = vrot.lane.b32.xlu1 %v136_v57, %s1103_s8  ;;  %197 = vrot.lane.b32.xlu0 %v135_v56, %s1105_s10 }
  0xa9   :  { %142 = vrot.lane.b32.xlu1 %v135_v56, %s1106_s15  ;;  %140 = vrot.lane.b32.xlu0 %v134_v55, %s1106_s15 }
  0xad   :  { %161 = vrot.lane.b32.xlu1 %v135_v56, %s1107_s16  ;;  %159 = vrot.lane.b32.xlu0 %v134_v55, %s1107_s16 }
  0xb1   :  { %199 = vrot.lane.b32.xlu1 %v136_v57, %s1105_s10  ;;  %181 = vrot.lane.b32.xlu0 %v136_v57, %s1104_s9 }
  0xb5   :  { %163 = vrot.lane.b32.xlu1 %v136_v57, %s1107_s16  ;;  %144 = vrot.lane.b32.xlu0 %v136_v57, %s1106_s15 }
  0xb9   :  { %469 = vrot.lane.b32.xlu1 %v1316_v20, %s1100_s30  ;;  %467 = vrot.lane.b32.xlu0 %v1312_v19, %s1100_s30 }
  0xbd   :  { %435 = vrot.lane.b32.xlu1 %v1316_v20, %s1101_s6  ;;  %433 = vrot.lane.b32.xlu0 %v1312_v19, %s1101_s6 }
  0xc1   :  { %452 = vrot.lane.b32.xlu1 %v1316_v20, %s1102_s7  ;;  %450 = vrot.lane.b32.xlu0 %v1312_v19, %s1102_s7 }
  0xc5   :  { %416 = vrot.lane.b32.xlu1 %v1312_v19, %s1103_s8  ;;  %471 = vrot.lane.b32.xlu0 %v1333_v23, %s1100_s30 }
  0xc9   :  { %437 = vrot.lane.b32.xlu1 %v1333_v23, %s1101_s6  ;;  %418 = vrot.lane.b32.xlu0 %v1316_v20, %s1103_s8 }
  0xcd   :  { %373 = vrot.lane.b32.xlu1 %v1312_v19, %s1104_s9  ;;  %454 = vrot.lane.b32.xlu0 %v1333_v23, %s1102_s7 }
  0xd1   :  { %390 = vrot.lane.b32.xlu1 %v1312_v19, %s1105_s10  ;;  %375 = vrot.lane.b32.xlu0 %v1316_v20, %s1104_s9 }
  0xd5   :  { %420 = vrot.lane.b32.xlu1 %v1333_v23, %s1103_s8  ;;  %392 = vrot.lane.b32.xlu0 %v1316_v20, %s1105_s10 }
  0xd9   :  { %341 = vrot.lane.b32.xlu1 %v1316_v20, %s1106_s15  ;;  %339 = vrot.lane.b32.xlu0 %v1312_v19, %s1106_s15 }
  0xdd   :  { %358 = vrot.lane.b32.xlu1 %v1316_v20, %s1107_s16  ;;  %356 = vrot.lane.b32.xlu0 %v1312_v19, %s1107_s16 }
  0xe1   :  { %394 = vrot.lane.b32.xlu1 %v1333_v23, %s1105_s10  ;;  %377 = vrot.lane.b32.xlu0 %v1333_v23, %s1104_s9 }
  0xe5   :  { %360 = vrot.lane.b32.xlu1 %v1333_v23, %s1107_s16  ;;  %343 = vrot.lane.b32.xlu0 %v1333_v23, %s1106_s15 }
  0xfb   :  { %v279_v24 = vpop.permute.xlu1 %278  ;;  %v277_v25 = vpop.permute.xlu0 %276 }
  0xfc   :  { %v283_v26 = vrot.slane %v279_v24, 4  ;;  %v282_v27 = vrot.slane %v277_v25, 4 }
  0xfe   :  { %v285_v28 = vsel %vm149_vm7, %v282_v27, %v283_v26 }
  0xff   :  { %v243_v29 = vpop.permute.xlu1 %242  ;;  %v241_v30 = vpop.permute.xlu0 %240  ;;  %v287_v31 = vsel %vm286_vm8, %v285_v28, %v279_v24 }
 0x100   :  { %v247_v32 = vrot.slane %v243_v29, 4  ;;  %v246_v33 = vrot.slane %v241_v30, 4  ;;  %v1057_v34 = vcombine.high %v287_v31, %v287_v31  ;;  %v1056_v35 = vcombine.low %v287_v31, %v287_v31 }
 0x102   :  { %1064 = vmatprep.subr.msk.bf16.mxu0 %vm149_vm7, %v1057_v34  ;;  %v707_v36 = vsel %vm149_vm7, %v1056_v35, 0  ;;  %v249_v39 = vsel %vm149_vm7, %v246_v33, %v247_v32 }
 0x103   :  { %v261_v37 = vpop.permute.xlu1 %260  ;;  %737 = vmatpush1.bf16.msra.mxu0 %v707_v36  ;;  %v259_v38 = vpop.permute.xlu0 %258  ;;  %v251_v45 = vsel %vm250_vm9, %v249_v39, %v243_v29 }
 0x104   :  { %v265_v40 = vrot.slane %v261_v37, 4  ;;  %v264_v41 = vrot.slane %v259_v38, 4 }
 0x106   :  { %v267_v42 = vsel %vm149_vm7, %v264_v41, %v265_v40 }
 0x107   :  { %v223_v43 = vpop.permute.xlu1 %222  ;;  %v281_v44 = vpop.permute.xlu0 %280  ;;  %v269_v46 = vsel %vm268_vm10, %v267_v42, %v261_v37 }
 0x108   :  { %v284_v47 = vrot.slane %v281_v44, 4  ;;  %v1049_v48 = vcombine.high %v251_v45, %v269_v46  ;;  %v1048_v49 = vcombine.low %v251_v45, %v269_v46  ;;  %v228_v51 = vrot.slane %v223_v43, 4 }
 0x10a   :  { %v288_v50 = vsel %vm149_vm7, %v283_v26, %v284_v47  ;;  %738 = vmatprep.subr.bf16.mxu0 %v1049_v48 }
 0x10b   :  { %v289_v52 = vsel %vm286_vm8, %v288_v50, %v281_v44  ;;  %v245_v53 = vpop.permute.xlu1 %244  ;;  %739 = vmatpush1.bf16.msra.mxu0 %v1048_v49  ;;  %v225_v54 = vpop.permute.xlu0 %224 }
 0x10c   :  { %v248_v55 = vrot.slane %v245_v53, 4  ;;  %v229_v56 = vrot.slane %v225_v54, 4  ;;  %v1059_v57 = vcombine.high %v289_v52, %v289_v52  ;;  %v1058_v58 = vcombine.low %v289_v52, %v289_v52 }
 0x10e   :  { %v231_v59 = vsel %vm149_vm7, %v228_v51, %v229_v56  ;;  %1066 = vmatprep.subr.msk.bf16.mxu1 %vm149_vm7, %v1059_v57  ;;  %v713_v60 = vsel %vm149_vm7, %v1058_v58, 0  ;;  %v252_v3 = vsel %vm149_vm7, %v247_v32, %v248_v55 }
 0x10f   :  { %v233_v63 = vsel %vm232_vm11, %v231_v59, %v225_v54  ;;  %v178_v1 = vpop.permute.xlu1 %177  ;;  %778 = vmatpush1.bf16.msra.mxu1 %v713_v60  ;;  %v263_v2 = vpop.permute.xlu0 %262  ;;  %v253_v12 = vsel %vm250_vm9, %v252_v3, %v245_v53 }
 0x110   :  { %v1040_v4 = vcombine.low %v1270_v61, %v233_v63  ;;  %v1041_v5 = vcombine.high %v1270_v61, %v233_v63  ;;  %v266_v9 = vrot.slane %v263_v2, 4  ;;  %v183_v22 = vrot.slane %v178_v1, 4  ;;  %v1410_v63 = vld [vmem:[%s1510_s1] sm:$0xf] }
 0x112   :  { %v270_v11 = vsel %vm149_vm7, %v265_v40, %v266_v9  ;;  %740 = vmatprep.subr.bf16.mxu0 %v1041_v5 }
 0x113   :  { %v271_v14 = vsel %vm268_vm10, %v270_v11, %v263_v2  ;;  %v196_v15 = vpop.permute.xlu1 %195  ;;  %v180_v16 = vpop.permute.xlu0 %179  ;;  %741 = vmatpush1.bf16.msra.mxu0 %v1040_v4 }
 0x114   :  { %v1050_v17 = vcombine.low %v253_v12, %v271_v14  ;;  %v1051_v18 = vcombine.high %v253_v12, %v271_v14  ;;  %v184_v21 = vrot.slane %v180_v16, 4  ;;  %v201_v61 = vrot.slane %v196_v15, 4 }
 0x116   :  { %779 = vmatprep.subr.bf16.mxu1 %v1051_v18  ;;  %v186_v26 = vsel %vm149_vm7, %v183_v22, %v184_v21 }
 0x117   :  { %v227_v24 = vpop.permute.xlu1 %226  ;;  %780 = vmatpush1.bf16.msra.mxu1 %v1050_v17  ;;  %v198_v25 = vpop.permute.xlu0 %197  ;;  %v188_v34 = vsel %vm187_vm12, %v178_v1, %v186_v26 }
 0x118   :  { %v230_v27 = vrot.slane %v227_v24, 4  ;;  %v202_v28 = vrot.slane %v198_v25, 4 }
 0x11a   :  { %v234_v29 = vsel %vm149_vm7, %v229_v56, %v230_v27  ;;  %v204_v30 = vsel %vm149_vm7, %v201_v61, %v202_v28 }
 0x11b   :  { %v235_v31 = vsel %vm232_vm11, %v234_v29, %v227_v24  ;;  %v143_v32 = vpop.permute.xlu1 %142  ;;  %v141_v33 = vpop.permute.xlu0 %140  ;;  %v206_v35 = vsel %vm205_vm13, %v196_v15, %v204_v30 }
 0x11c   :  { %v1042_v36 = vcombine.low %v1273_v62, %v235_v31  ;;  %v1043_v37 = vcombine.high %v1273_v62, %v235_v31  ;;  %v147_v38 = vrot.slane %v143_v32, 4  ;;  %v146_v39 = vrot.slane %v141_v33, 4 }
 0x11d   :  { %v1033_v40 = vcombine.high %v188_v34, %v206_v35  ;;  %v1032_v41 = vcombine.low %v188_v34, %v206_v35 }
 0x11e   :  { %781 = vmatprep.subr.bf16.mxu1 %v1043_v37  ;;  %v150_v44 = vsel %vm149_vm7, %v146_v39, %v147_v38 }
 0x11f   :  { %742 = vmatprep.subr.bf16.mxu0 %v1033_v40  ;;  %v162_v42 = vpop.permute.xlu1 %161  ;;  %782 = vmatpush1.bf16.msra.mxu1 %v1042_v36  ;;  %v160_v43 = vpop.permute.xlu0 %159  ;;  %v152_v62 = vsel %vm151_vm14, %v141_v33, %v150_v44 }
 0x120   :  { %v166_v45 = vrot.slane %v162_v42, 4  ;;  %v165_v46 = vrot.slane %v160_v43, 4  ;;  %743 = vmatpush1.bf16.msra.mxu0 %v1032_v41 }
 0x122   :  { %v168_v47 = vsel %vm149_vm7, %v165_v46, %v166_v45 }
 0x123   :  { %v170_v48 = vsel %vm169_vm15, %v160_v43, %v168_v47  ;;  %v200_v49 = vpop.permute.xlu1 %199  ;;  %v182_v50 = vpop.permute.xlu0 %181 }
 0x124   :  { %v1024_v51 = vcombine.low %v152_v62, %v170_v48  ;;  %v1025_v52 = vcombine.high %v152_v62, %v170_v48  ;;  %v203_v53 = vrot.slane %v200_v49, 4  ;;  %v185_v54 = vrot.slane %v182_v50, 4 }
 0x125   :  { %v407_v62 = vrot.slane %v1312_v19, 4  ;;  %v408_v48 = vrot.slane %v1316_v20, 4 }
 0x126   :  { %v207_v55 = vsel %vm149_vm7, %v202_v28, %v203_v53  ;;  %v189_v56 = vsel %vm149_vm7, %v184_v21, %v185_v54  ;;  %744 = vmatprep.subr.bf16.mxu0 %v1025_v52 }
 0x127   :  { %v164_v57 = vpop.permute.xlu1 %163  ;;  %v145_v58 = vpop.permute.xlu0 %144  ;;  %745 = vmatpush1.bf16.msra.mxu0 %v1024_v51  ;;  %v190_v59 = vsel %vm187_vm12, %v180_v16, %v189_v56  ;;  %v208_v60 = vsel %vm205_vm13, %v198_v25, %v207_v55  ;;  %v410_v56 = vsel %vm149_vm7, %v407_v62, %v408_v48 }
 0x128   :  { %v167_v1 = vrot.slane %v164_v57, 4  ;;  %v148_v2 = vrot.slane %v145_v58, 4  ;;  %v1035_v3 = vcombine.high %v190_v59, %v208_v60  ;;  %v1034_v4 = vcombine.low %v190_v59, %v208_v60 }
 0x12a   :  { %v171_v5 = vsel %vm149_vm7, %v166_v45, %v167_v1  ;;  %v153_v9 = vsel %vm149_vm7, %v147_v38, %v148_v2  ;;  %783 = vmatprep.subr.bf16.mxu1 %v1035_v3  ;;  %1065 = vmatmul.mubr.msk.bf16.vlgmr.msra.gmra.mxu0 %vm701_vm0, %v1410_v63 }
 0x12b   :  { %v470_v11 = vpop.permute.xlu1 %469  ;;  %784 = vmatpush1.bf16.msra.mxu1 %v1034_v4  ;;  %v468_v12 = vpop.permute.xlu0 %467  ;;  %v154_v14 = vsel %vm151_vm14, %v143_v32, %v153_v9  ;;  %v172_v15 = vsel %vm169_vm15, %v162_v42, %v171_v5  ;;  %844 = vmatprep.mubr.bf16.mxu0 %v1097_v0 }
 0x12c   :  { %v474_v16 = vrot.slane %v470_v11, 4  ;;  %v473_v17 = vrot.slane %v468_v12, 4  ;;  %v1027_v18 = vcombine.high %v154_v14, %v172_v15  ;;  %v1026_v21 = vcombine.low %v154_v14, %v172_v15 }
 0x12e   :  { %v476_v22 = vsel %vm149_vm7, %v473_v17, %v474_v16  ;;  %785 = vmatprep.subr.bf16.mxu1 %v1027_v18 }
 0x12f   :  { %v477_v24 = vsel %vm286_vm8, %v476_v22, %v470_v11  ;;  %v436_v25 = vpop.permute.xlu1 %435  ;;  %786 = vmatpush1.bf16.msra.mxu1 %v1026_v21  ;;  %v434_v61 = vpop.permute.xlu0 %433 }
 0x130   :  { %v440_v26 = vrot.slane %v436_v25, 4  ;;  %v439_v27 = vrot.slane %v434_v61, 4  ;;  %v1061_v28 = vcombine.high %v477_v24, %v477_v24  ;;  %v1060_v29 = vcombine.low %v477_v24, %v477_v24 }
 0x132   :  { %1068 = vmatprep.subr.msk.bf16.mxu0 %vm149_vm7, %v1061_v28  ;;  %v719_v30 = vsel %vm149_vm7, %v1060_v29, 0  ;;  %1067 = vmatmul.mubr.msk.bf16.vlgmr.msra.gmra.mxu1 %vm701_vm0, %v1410_v63  ;;  %v442_v33 = vsel %vm149_vm7, %v439_v27, %v440_v26 }
 0x133   :  { %v453_v31 = vpop.permute.xlu1 %452  ;;  %v451_v32 = vpop.permute.xlu0 %450  ;;  %819 = vmatpush1.bf16.msra.mxu0 %v719_v30  ;;  %885 = vmatprep.mubr.bf16.mxu1 %v1097_v0  ;;  %v443_v39 = vsel %vm250_vm9, %v442_v33, %v436_v25 }
 0x134   :  { %v457_v34 = vrot.slane %v453_v31, 4  ;;  %v456_v35 = vrot.slane %v451_v32, 4 }
 0x136   :  { %v459_v36 = vsel %vm149_vm7, %v456_v35, %v457_v34 }
 0x137   :  { %v417_v37 = vpop.permute.xlu1 %416  ;;  %v472_v38 = vpop.permute.xlu0 %471  ;;  %v460_v40 = vsel %vm268_vm10, %v459_v36, %v453_v31 }
 0x138   :  { %v475_v41 = vrot.slane %v472_v38, 4  ;;  %v1052_v42 = vcombine.low %v443_v39, %v460_v40  ;;  %v1053_v43 = vcombine.high %v443_v39, %v460_v40  ;;  %v422_v45 = vrot.slane %v417_v37, 4 }
 0x13a   :  { %v478_v44 = vsel %vm149_vm7, %v474_v16, %v475_v41  ;;  %820 = vmatprep.subr.bf16.mxu0 %v1053_v43  ;;  %v409_v16 = vrot.slane %v1333_v23, 4 }
 0x13b   :  { %v479_v46 = vsel %vm286_vm8, %v478_v44, %v472_v38  ;;  %v438_v47 = vpop.permute.xlu1 %437  ;;  %v419_v49 = vpop.permute.xlu0 %418  ;;  %821 = vmatpush1.bf16.msra.mxu0 %v1052_v42 }
 0x13c   :  { %v1062_v50 = vcombine.low %v479_v46, %v479_v46  ;;  %v1063_v51 = vcombine.high %v479_v46, %v479_v46  ;;  %v441_v52 = vrot.slane %v438_v47, 4  ;;  %v423_v53 = vrot.slane %v419_v49, 4 }
 0x13d   :  { %v411_v27 = vsel %vm149_vm7, %v408_v48, %v409_v16 }
 0x13e   :  { %v425_v54 = vsel %vm149_vm7, %v422_v45, %v423_v53  ;;  %1070 = vmatprep.subr.msk.bf16.mxu1 %vm149_vm7, %v1063_v51  ;;  %v725_v55 = vsel %vm149_vm7, %v1062_v50, 0  ;;  %v444_v20 = vsel %vm149_vm7, %v440_v26, %v441_v52 }
 0x13f   :  { %v426_v57 = vsel %vm232_vm11, %v425_v54, %v419_v49  ;;  %v374_v58 = vpop.permute.xlu1 %373  ;;  %860 = vmatpush1.bf16.msra.mxu1 %v725_v55  ;;  %v455_v19 = vpop.permute.xlu0 %454  ;;  %v445_v3 = vsel %vm250_vm9, %v444_v20, %v438_v47  ;;  %vm964_vm9 = vcmask 15360  }
 0x140   :  { %v1044_v59 = vcombine.low %v410_v56, %v426_v57  ;;  %v1045_v60 = vcombine.high %v410_v56, %v426_v57  ;;  %v458_v1 = vrot.slane %v455_v19, 4  ;;  %v379_v15 = vrot.slane %v374_v58, 4 }
 0x142   :  { %v461_v2 = vsel %vm149_vm7, %v457_v34, %v458_v1  ;;  %822 = vmatprep.subr.bf16.mxu0 %v1045_v60 }
 0x143   :  { %v462_v4 = vsel %vm268_vm10, %v461_v2, %v455_v19  ;;  %v391_v5 = vpop.permute.xlu1 %390  ;;  %v376_v9 = vpop.permute.xlu0 %375  ;;  %823 = vmatpush1.bf16.msra.mxu0 %v1044_v59 }
 0x144   :  { %v1054_v11 = vcombine.low %v445_v3, %v462_v4  ;;  %v1055_v12 = vcombine.high %v445_v3, %v462_v4  ;;  %v380_v14 = vrot.slane %v376_v9, 4  ;;  %v396_v21 = vrot.slane %v391_v5, 4 }
 0x146   :  { %861 = vmatprep.subr.bf16.mxu1 %v1055_v12  ;;  %v382_v22 = vsel %vm149_vm7, %v379_v15, %v380_v14 }
 0x147   :  { %v421_v17 = vpop.permute.xlu1 %420  ;;  %862 = vmatpush1.bf16.msra.mxu1 %v1054_v11  ;;  %v393_v18 = vpop.permute.xlu0 %392  ;;  %v383_v23 = vsel %vm187_vm12, %v374_v58, %v382_v22 }
 0x148   :  { %v424_v24 = vrot.slane %v421_v17, 4  ;;  %v397_v25 = vrot.slane %v393_v18, 4 }
 0x14a   :  { %v427_v61 = vsel %vm149_vm7, %v423_v53, %v424_v24  ;;  %v399_v26 = vsel %vm149_vm7, %v396_v21, %v397_v25 }
 0x14b   :  { %v428_v28 = vsel %vm232_vm11, %v427_v61, %v421_v17  ;;  %v342_v29 = vpop.permute.xlu1 %341  ;;  %v340_v30 = vpop.permute.xlu0 %339  ;;  %v400_v31 = vsel %vm205_vm13, %v391_v5, %v399_v26  ;;  %v897_v5 = vand.u32 31, %v1160_v8  ;;  %v898_v17 = vand.u32 31, %v1164_v10 }
 0x14c   :  { %v1046_v32 = vcombine.low %v411_v27, %v428_v28  ;;  %v1047_v33 = vcombine.high %v411_v27, %v428_v28  ;;  %v346_v34 = vrot.slane %v342_v29, 4  ;;  %v345_v35 = vrot.slane %v340_v30, 4 }
 0x14d   :  { %v1036_v36 = vcombine.low %v383_v23, %v400_v31  ;;  %v1037_v37 = vcombine.high %v383_v23, %v400_v31  ;;  %vm905_vm2 = vcmp.lt.s32.totalorder %v897_v5, 16  ;;  %vm906_vm3 = vcmp.lt.s32.totalorder %v898_v17, 16 }
 0x14e   :  { %863 = vmatprep.subr.bf16.mxu1 %v1047_v33  ;;  %v348_v40 = vsel %vm149_vm7, %v345_v35, %v346_v34  ;;  %v26_v27 = vadd.s32 640, %v1154_v6  ;;  %v894_v33 = vadd.s32 768, %v1154_v6 }
 0x14f   :  { %824 = vmatprep.subr.bf16.mxu0 %v1037_v37  ;;  %v359_v38 = vpop.permute.xlu1 %358  ;;  %864 = vmatpush1.bf16.msra.mxu1 %v1046_v32  ;;  %v357_v39 = vpop.permute.xlu0 %356  ;;  %v349_v44 = vsel %vm151_vm14, %v340_v30, %v348_v40  ;;  %v895_v37 = vadd.s32 896, %v1154_v6 }
 0x150   :  { %v363_v41 = vrot.slane %v359_v38, 4  ;;  %v362_v42 = vrot.slane %v357_v39, 4  ;;  %825 = vmatpush1.bf16.msra.mxu0 %v1036_v36  ;;  %v901_v31 = vand.u32 31, %v26_v27 }
 0x152   :  { %v365_v43 = vsel %vm149_vm7, %v362_v42, %v363_v41  ;;  %vm909_vm6 = vcmp.lt.s32.totalorder %v901_v31, 16  ;;  %v902_v42 = vand.u32 31, %v894_v33 }
 0x153   :  { %v366_v45 = vsel %vm169_vm15, %v357_v39, %v365_v43  ;;  %v395_v46 = vpop.permute.xlu1 %394  ;;  %v378_v47 = vpop.permute.xlu0 %377 }
 0x154   :  { %v1028_v62 = vcombine.low %v349_v44, %v366_v45  ;;  %v1029_v48 = vcombine.high %v349_v44, %v366_v45  ;;  %v398_v49 = vrot.slane %v395_v46, 4  ;;  %v381_v50 = vrot.slane %v378_v47, 4 }
 0x155   :  { %v903_v47 = vand.u32 31, %v895_v37 }
 0x156   :  { %v401_v51 = vsel %vm149_vm7, %v397_v25, %v398_v49  ;;  %v384_v52 = vsel %vm149_vm7, %v380_v14, %v381_v50  ;;  %826 = vmatprep.subr.bf16.mxu0 %v1029_v48 }
 0x157   :  { %v361_v53 = vpop.permute.xlu1 %360  ;;  %v344_v54 = vpop.permute.xlu0 %343  ;;  %827 = vmatpush1.bf16.msra.mxu0 %v1028_v62  ;;  %v385_v55 = vsel %vm187_vm12, %v376_v9, %v384_v52  ;;  %v402_v56 = vsel %vm205_vm13, %v393_v18, %v401_v51  ;;  %v899_v18 = vand.u32 31, %v1167_v13  ;;  %vm911_vm8 = vcmp.lt.s32.totalorder %v903_v47, 16 }
 0x158   :  { %v364_v57 = vrot.slane %v361_v53, 4  ;;  %v347_v58 = vrot.slane %v344_v54, 4  ;;  %v1038_v19 = vcombine.low %v385_v55, %v402_v56  ;;  %v1039_v20 = vcombine.high %v385_v55, %v402_v56 }
 0x159   :  { %vm907_vm4 = vcmp.lt.s32.totalorder %v899_v18, 16 }
 0x15a   :  { %v367_v59 = vsel %vm149_vm7, %v363_v41, %v364_v57  ;;  %v350_v60 = vsel %vm149_vm7, %v346_v34, %v347_v58  ;;  %1069 = vmatmul.mubr.msk.bf16.vlgmr.msra.gmra.mxu0 %vm701_vm0, %v1410_v63  ;;  %865 = vmatprep.subr.bf16.mxu1 %v1039_v20  ;;  %vm910_vm7 = vcmp.lt.s32.totalorder %v902_v42, 16 }
 0x15b   :  { %866 = vmatpush1.bf16.msra.mxu1 %v1038_v19  ;;  %v351_v1 = vsel %vm151_vm14, %v342_v29, %v350_v60  ;;  %v368_v2 = vsel %vm169_vm15, %v359_v38, %v367_v59  ;;  %v900_v29 = vand.u32 31, %v1157_v7 }
 0x15c   :  { %v1030_v3 = vcombine.low %v351_v1, %v368_v2  ;;  %v1031_v4 = vcombine.high %v351_v1, %v368_v2 }
 0x15d   :  { %vm908_vm5 = vcmp.lt.s32.totalorder %v900_v29, 16 }
 0x15e   :  { %867 = vmatprep.subr.bf16.mxu1 %v1031_v4 }
 0x15f   :  { %868 = vmatpush1.bf16.msra.mxu1 %v1030_v3 }
 0x162   :  { %1071 = vmatmul.mubr.msk.bf16.vlgmr.msra.gmra.mxu1 %vm701_vm0, %v1410_v63  ;;  %v896_v63 = vand.u32 31, %v1154_v6 }
 0x164   :  { %vm904_vm1 = vcmp.lt.s32.totalorder %v896_v63, 16 }
 0x1ea   :  { %v764_v9 = vpop.f32.mrf.mxu0 }
 0x1eb   :  { %v928_v11 = vsel %vm904_vm1, %v764_v9, 0.0 }
 0x1ec   :  { %v766_v12 = vpop.f32.mrf.mxu0  ;;  %v945_v26 = vmul.f32 %v928_v11, %v928_v11 }
 0x1ed   :  { %v929_v14 = vsel %vm905_vm2, %v766_v12, 0.0 }
 0x1ee   :  { %v1080_v15 = vpack.c.bf16 %v929_v14, %v928_v11  ;;  %v768_v16 = vpop.f32.mrf.mxu0  ;;  %v946_v13 = vmul.f32 %v929_v14, %v929_v14  ;;  %v936_v28 = vadd.f32 %v929_v14, %v928_v11 }
 0x1f0   :  { %983 = vst [vmem:[%s1511_s4 + $0x4] sm:$0xff] %v1080_v15  ;;  %v769_v0 = vpop.f32.mrf.mxu0  ;;  %v953_v30 = vadd.f32 %v946_v13, %v945_v26 }
 0x1f2   :  { %v805_v21 = vpop.f32.mrf.mxu1 }
 0x1f3   :  { %v930_v22 = vsel %vm906_vm3, %v805_v21, 0.0 }
 0x1f4   :  { %v807_v8 = vpop.f32.mrf.mxu1  ;;  %v947_v23 = vmul.f32 %v930_v22, %v930_v22  ;;  %v937_v32 = vadd.f32 %v936_v28, %v930_v22 }
 0x1f5   :  { %v931_v24 = vsel %vm907_vm4, %v807_v8, 0.0 }
 0x1f6   :  { %v1081_v25 = vpack.c.bf16 %v931_v24, %v930_v22  ;;  %v809_v61 = vpop.f32.mrf.mxu1  ;;  %v954_v34 = vadd.f32 %v953_v30, %v947_v23  ;;  %v948_v35 = vmul.f32 %v931_v24, %v931_v24  ;;  %v938_v39 = vadd.f32 %v937_v32, %v931_v24 }
 0x1f8   :  { %984 = vst [vmem:[%s1511_s4 + $0xc] sm:$0xff] %v1081_v25  ;;  %v810_v10 = vpop.f32.mrf.mxu1  ;;  %v955_v7 = vadd.f32 %v954_v34, %v948_v35 }
 0x21a   :  { %v846_v36 = vpop.f32.mrf.mxu0 }
 0x21b   :  { %v932_v38 = vsel %vm908_vm5, %v846_v36, 0.0 }
 0x21c   :  { %v949_v40 = vmul.f32 %v932_v38, %v932_v38  ;;  %v848_v41 = vpop.f32.mrf.mxu0  ;;  %v939_v44 = vadd.f32 %v938_v39, %v932_v38 }
 0x21d   :  { %v933_v43 = vsel %vm909_vm6, %v848_v41, 0.0 }
 0x21e   :  { %v1082_v45 = vpack.c.bf16 %v933_v43, %v932_v38  ;;  %v850_v46 = vpop.f32.mrf.mxu0  ;;  %v956_v62 = vadd.f32 %v955_v7, %v949_v40  ;;  %v950_v48 = vmul.f32 %v933_v43, %v933_v43  ;;  %v940_v6 = vadd.f32 %v939_v44, %v933_v43 }
 0x220   :  { %1077 = vst [vmem:[%s1511_s4 + $0x1c] sm:$0xff] %v1082_v45  ;;  %v851_v49 = vpop.f32.mrf.mxu0  ;;  %v957_v52 = vadd.f32 %v956_v62, %v950_v48 }
 0x222   :  { %v887_v50 = vpop.f32.mrf.mxu1 }
 0x223   :  { %v934_v51 = vsel %vm910_vm7, %v887_v50, 0.0 }
 0x224   :  { %v941_v53 = vadd.f32 %v940_v6, %v934_v51  ;;  %v951_v54 = vmul.f32 %v934_v51, %v934_v51  ;;  %v889_v55 = vpop.f32.mrf.mxu1 }
 0x225   :  { %v935_v56 = vsel %vm911_vm8, %v889_v55, 0.0 }
 0x226   :  { %v952_v57 = vmul.f32 %v935_v56, %v935_v56  ;;  %v1083_v58 = vpack.c.bf16 %v935_v56, %v934_v51  ;;  %v891_v19 = vpop.f32.mrf.mxu1  ;;  %v942_v20 = vadd.f32 %v941_v53, %v935_v56  ;;  %v958_v59 = vadd.f32 %v957_v52, %v951_v54 }
 0x228   :  { %1078 = vst [vmem:[%s1511_s4 + $0x24] sm:$0xff] %v1083_v58  ;;  %v892_v60 = vpop.f32.mrf.mxu1  ;;  %943 = vadd.xlane.f32.xlu0 %v942_v20  ;;  %v959_v1 = vadd.f32 %v958_v59, %v952_v57 }
 0x22a   :  { %960 = vadd.xlane.f32.xlu1 %v959_v1 }
 0x2b1   :  { %v944_v2 = vpop.xlane.xlu0 %943 }
 0x2b3   :  { %v961_v3 = vpop.xlane.xlu1 %960 }
 0x2b4   :  { %v963_v4 = vsel %vm205_vm13, %v944_v2, %v961_v3 }
 0x2b5   :  { %965 = vst.msk [vmem:[%s1512_s5] sm:$0xff] %vm964_vm9, %v963_v4 }

</bundles_post_ra>
